<compile_context>
chip_gen: v7x
topology: tpu7x:2x2x1
jax: 0.10.0
libtpu: 0.0.40
codegen_flags: <defaults>
</compile_context>

<pallas_src>
import functools

import jax
import jax.numpy as jnp
from jax.experimental import pallas as pl
from jax.experimental.pallas import tpu as pltpu


# ----------------------------------------------------------------------------
# Fully fused forward kernel (embedding -> L encoder layers -> mean over tokens)
# ----------------------------------------------------------------------------
def _fused_forward_kernel(
    ids_ref, emb_ref, pos_ref, seg_ref, segt_ref,
    wq_ref, wk_ref, wv_ref, bq_ref, bk_ref, bv_ref,
    wo_ref, bo_ref, ln1g_ref, ln1b_ref,
    w1_ref, b1_ref, w2_ref, b2_ref,
    ln2g_ref, ln2b_ref,
    out_ref,
    *, num_layers, num_heads, head_dim, seq_b, tok_t, eps):
    E = num_heads * head_dim
    rows = seq_b * tok_t
    vocab = emb_ref.shape[0]

    # ---- embedding gather (one-hot matmul against the resident table) + pos ----
    ids = ids_ref[...]                                              # (rows, 1) int32
    onehot = (jax.lax.broadcasted_iota(jnp.int32, (rows, vocab), 1)
              == ids).astype(jnp.float32)                           # (rows, vocab)
    x = jnp.dot(onehot, emb_ref[...], preferred_element_type=jnp.float32)
    x = x + pos_ref[...]                                            # (rows, E) f32

    seg = seg_ref[...]        # (E, H)  per-head segmented lane-sum matrix
    segt = segt_ref[...]      # (H, E)  per-head lane-broadcast matrix

    def layer_norm(z, g, b):
        mu = jnp.mean(z, axis=-1, keepdims=True)
        zc = z - mu
        var = jnp.mean(zc * zc, axis=-1, keepdims=True)
        return zc * jax.lax.rsqrt(var + eps) * g + b

    for l in range(num_layers):
        xb = x.astype(jnp.bfloat16)
        # --- full-E QKV projections (bf16 MXU, f32 accumulate); softmax scale
        #     1/sqrt(d) is pre-folded into wq / bq. ---
        q = jnp.dot(xb, wq_ref[l], preferred_element_type=jnp.float32) + bq_ref[l]
        k = jnp.dot(xb, wk_ref[l], preferred_element_type=jnp.float32) + bk_ref[l]
        v = jnp.dot(xb, wv_ref[l], preferred_element_type=jnp.float32) + bv_ref[l]

        # --- attention over the tiny torch-sequence axis (= caller batch, size B).
        #     Rows are (b, t)-ordered, so slab i = the tok_t rows with b == i
        #     (sublane-aligned static slices).  Per-head scores for all heads at
        #     once: s_ij[t, h] = sum_d q_i[t, h*d + d'] * k_j[t, h*d + d']
        #                      = ((q_i * k_j) @ seg)[t, h]. ---
        qs = [q[i * tok_t:(i + 1) * tok_t, :] for i in range(seq_b)]
        ks = [k[i * tok_t:(i + 1) * tok_t, :] for i in range(seq_b)]
        vs = [v[i * tok_t:(i + 1) * tok_t, :] for i in range(seq_b)]

        outs = []
        for i in range(seq_b):
            s_i = [jnp.dot(qs[i] * ks[j], seg, preferred_element_type=jnp.float32)
                   for j in range(seq_b)]                           # each (T, H)
            m = s_i[0]
            for j in range(1, seq_b):
                m = jnp.maximum(m, s_i[j])
            p_i = [jnp.exp(s - m) for s in s_i]
            denom = p_i[0]
            for j in range(1, seq_b):
                denom = denom + p_i[j]
            inv = 1.0 / denom
            o_i = None
            for j in range(seq_b):
                w_ij = jnp.dot(p_i[j] * inv, segt,
                               preferred_element_type=jnp.float32)  # (T, E)
                term = w_ij * vs[j]
                o_i = term if o_i is None else o_i + term
            outs.append(o_i)
        attn = jnp.concatenate(outs, axis=0) if seq_b > 1 else outs[0]  # (rows, E)

        # --- out-projection + residual + LayerNorm 1 ---
        attn = jnp.dot(attn.astype(jnp.bfloat16), wo_ref[l],
                       preferred_element_type=jnp.float32) + bo_ref[l]
        h1 = layer_norm(x + attn, ln1g_ref[l], ln1b_ref[l])

        # --- FFN (hidden activation never leaves VMEM) + residual + LayerNorm 2 ---
        f = jnp.dot(h1.astype(jnp.bfloat16), w1_ref[l],
                    preferred_element_type=jnp.float32) + b1_ref[l]
        f = jnp.maximum(f, 0.0)
        f = jnp.dot(f.astype(jnp.bfloat16), w2_ref[l],
                    preferred_element_type=jnp.float32) + b2_ref[l]
        x = layer_norm(h1 + f, ln2g_ref[l], ln2b_ref[l])

    # ---- final mean over the token axis (original .mean(dim=1)) ----
    means = [jnp.mean(x[b * tok_t:(b + 1) * tok_t, :], axis=0, keepdims=True)
             for b in range(seq_b)]
    res = jnp.concatenate(means, axis=0) if seq_b > 1 else means[0]
    out_ref[...] = res.astype(out_ref.dtype)


# ----------------------------------------------------------------------------
# One-time parameter preparation (hoisted out of the jitted forward)
# ----------------------------------------------------------------------------
def prepare_params(params, num_heads):
    """Fold the softmax scale into Q, split/stack/pre-cast weights to bf16."""
    E = params["embedding"].shape[1]
    d = E // num_heads
    L = len(params["layers"])
    scale = 1.0 / (d ** 0.5)

    vocab = params["embedding"].shape[0]
    pad = (-vocab) % 8                       # sublane-pad the table (zeros, unused)
    emb = jnp.pad(params["embedding"].astype(jnp.float32), ((0, pad), (0, 0)))

    def stack(name):
        return jnp.stack([params["layers"][l][name] for l in range(L)])

    w_qkv = stack("w_qkv")                   # (L, E, 3E)
    b_qkv = stack("b_qkv")                   # (L, 3E)

    e_idx = jnp.arange(E) // d
    h_idx = jnp.arange(num_heads)
    seg = (e_idx[:, None] == h_idx[None, :]).astype(jnp.float32)    # (E, H)

    return {
        "emb": emb,
        "pos": params["pos"].astype(jnp.float32),
        "seg": seg,
        "seg_t": jnp.transpose(seg),                                # (H, E)
        "wq": (w_qkv[:, :, :E] * scale).astype(jnp.bfloat16),
        "wk": w_qkv[:, :, E:2 * E].astype(jnp.bfloat16),
        "wv": w_qkv[:, :, 2 * E:].astype(jnp.bfloat16),
        "bq": (b_qkv[:, None, :E] * scale).astype(jnp.float32),
        "bk": b_qkv[:, None, E:2 * E].astype(jnp.float32),
        "bv": b_qkv[:, None, 2 * E:].astype(jnp.float32),
        "wo": stack("w_o").astype(jnp.bfloat16),
        "bo": stack("b_o")[:, None, :].astype(jnp.float32),
        "ln1g": stack("ln1_g")[:, None, :].astype(jnp.float32),
        "ln1b": stack("ln1_b")[:, None, :].astype(jnp.float32),
        "w1": stack("w_1").astype(jnp.bfloat16),
        "b1": stack("b_1")[:, None, :].astype(jnp.float32),
        "w2": stack("w_2").astype(jnp.bfloat16),
        "b2": stack("b_2")[:, None, :].astype(jnp.float32),
        "ln2g": stack("ln2_g")[:, None, :].astype(jnp.float32),
        "ln2b": stack("ln2_b")[:, None, :].astype(jnp.float32),
    }


# ----------------------------------------------------------------------------
# Forward wrapper: one pallas_call for the whole model
# ----------------------------------------------------------------------------
def transformer_encoder_forward(tokens, prep, *, num_heads, num_layers):
    B, T = tokens.shape
    E = prep["emb"].shape[1]
    rows = B * T

    ids = tokens.astype(jnp.int32).reshape(rows, 1)      # (b, t) row order
    pos_rows = jnp.tile(prep["pos"][:T], (B, 1))         # pos[t] for each (b, t) row

    kernel = functools.partial(
        _fused_forward_kernel, num_layers=num_layers, num_heads=num_heads,
        head_dim=E // num_heads, seq_b=B, tok_t=T, eps=1e-5)

    args = (ids, prep["emb"], pos_rows, prep["seg"], prep["seg_t"],
            prep["wq"], prep["wk"], prep["wv"], prep["bq"], prep["bk"], prep["bv"],
            prep["wo"], prep["bo"], prep["ln1g"], prep["ln1b"],
            prep["w1"], prep["b1"], prep["w2"], prep["b2"],
            prep["ln2g"], prep["ln2b"])

    vmem_spec = pl.BlockSpec(memory_space=pltpu.MemorySpace.VMEM)
    return pl.pallas_call(
        kernel,
        out_shape=jax.ShapeDtypeStruct((B, E), jnp.float32),
        in_specs=[vmem_spec] * len(args),
        out_specs=vmem_spec,
    )(*args)


# ----------------------------------------------------------------------------
# Pure-JAX f32 reference (same math) for a sanity check
# ----------------------------------------------------------------------------
def _ln_ref(z, g, b, eps=1e-5):
    mu = z.mean(-1, keepdims=True)
    var = ((z - mu) ** 2).mean(-1, keepdims=True)
    return (z - mu) / jnp.sqrt(var + eps) * g + b


def reference_model(tokens, params, num_heads, num_layers):
    x = params["embedding"][tokens] + params["pos"][: tokens.shape[1], :]
    S, N, E = x.shape                       # S = caller batch (torch seq), N = T
    d = E // num_heads
    for l in range(num_layers):
        p = params["layers"][l]
        x2d = x.reshape(S * N, E)
        qkv = (x2d @ p["w_qkv"] + p["b_qkv"]).reshape(S, N, 3, num_heads, d)
        q, k, v = qkv[:, :, 0], qkv[:, :, 1], qkv[:, :, 2]       # (S, N, H, d)
        s = jnp.einsum("snhd,tnhd->nhst", q, k) / (d ** 0.5)
        a = jax.nn.softmax(s, axis=-1)
        o = jnp.einsum("nhst,tnhd->snhd", a, v).reshape(S * N, E)
        o = o @ p["w_o"] + p["b_o"]
        x2d = _ln_ref(x2d + o, p["ln1_g"], p["ln1_b"])
        h = jnp.maximum(x2d @ p["w_1"] + p["b_1"], 0.0)
        h = h @ p["w_2"] + p["b_2"]
        x2d = _ln_ref(x2d + h, p["ln2_g"], p["ln2_b"])
        x = x2d.reshape(S, N, E)
    return x.mean(axis=1)


# ----------------------------------------------------------------------------
# Deterministic parameter init (shapes from the module's __init__)
# ----------------------------------------------------------------------------
def init_params(key, vocab_size, embed_dim, num_heads, hidden_dim, num_layers):
    keys = jax.random.split(key, 2 + num_layers)
    params = {
        "embedding": 0.1 * jax.random.normal(keys[0], (vocab_size, embed_dim), jnp.float32),
        "pos": 0.02 * jax.random.normal(keys[1], (128, embed_dim), jnp.float32),
        "layers": [],
    }
    for l in range(num_layers):
        ks = jax.random.split(keys[2 + l], 5)
        s = 0.05
        params["layers"].append({
            # weights stored pre-transposed so kernels compute x @ W
            "w_qkv": s * jax.random.normal(ks[0], (embed_dim, 3 * embed_dim), jnp.float32),
            "b_qkv": s * jax.random.normal(ks[1], (3 * embed_dim,), jnp.float32),
            "w_o":   s * jax.random.normal(ks[2], (embed_dim, embed_dim), jnp.float32),
            "b_o":   jnp.zeros((embed_dim,), jnp.float32),
            "w_1":   s * jax.random.normal(ks[3], (embed_dim, hidden_dim), jnp.float32),
            "b_1":   jnp.zeros((hidden_dim,), jnp.float32),
            "w_2":   s * jax.random.normal(ks[4], (hidden_dim, embed_dim), jnp.float32),
            "b_2":   jnp.zeros((embed_dim,), jnp.float32),
            "ln1_g": jnp.ones((embed_dim,), jnp.float32),
            "ln1_b": jnp.zeros((embed_dim,), jnp.float32),
            "ln2_g": jnp.ones((embed_dim,), jnp.float32),
            "ln2_b": jnp.zeros((embed_dim,), jnp.float32),
        })
    return params


if __name__ == "__main__":
    vocab_size, embed_dim, num_heads, hidden_dim, num_layers = 50, 32, 4, 64, 2
    B, T = 2, 8

    key = jax.random.PRNGKey(0)
    kp, kx = jax.random.split(key)
    params = init_params(kp, vocab_size, embed_dim, num_heads, hidden_dim, num_layers)
    tokens = jax.random.randint(kx, (B, T), 0, vocab_size, dtype=jnp.int32)

    # One-time weight prep (scale fold, bf16 casts, stacking) — outside the jit.
    prep = jax.tree_util.tree_map(jax.block_until_ready,
                                  prepare_params(params, num_heads))

    fwd = jax.jit(functools.partial(transformer_encoder_forward,
                                    num_heads=num_heads, num_layers=num_layers))
    out = jax.block_until_ready(fwd(tokens, prep))
    assert out.shape == (B, embed_dim), out.shape

    ref = reference_model(tokens, params, num_heads, num_layers)
    err = float(jnp.max(jnp.abs(out - ref)))
    if err > 5e-2:
        raise RuntimeError(f"kernel/reference mismatch: max abs err = {err}")

    print("KERNEL_OK")
</pallas_src>

<mosaic_0001>
module attributes {stable_mosaic.version = 11 : i64} {
  func.func @_fused_forward_kernel(%arg0: memref<16x1xi32, #tpu.memory_space<vmem>>, %arg1: memref<56x32xf32, #tpu.memory_space<vmem>>, %arg2: memref<16x32xf32, #tpu.memory_space<vmem>>, %arg3: memref<32x4xf32, #tpu.memory_space<vmem>>, %arg4: memref<4x32xf32, #tpu.memory_space<vmem>>, %arg5: memref<2x32x32xbf16, #tpu.memory_space<vmem>>, %arg6: memref<2x32x32xbf16, #tpu.memory_space<vmem>>, %arg7: memref<2x32x32xbf16, #tpu.memory_space<vmem>>, %arg8: memref<2x1x32xf32, #tpu.memory_space<vmem>>, %arg9: memref<2x1x32xf32, #tpu.memory_space<vmem>>, %arg10: memref<2x1x32xf32, #tpu.memory_space<vmem>>, %arg11: memref<2x32x32xbf16, #tpu.memory_space<vmem>>, %arg12: memref<2x1x32xf32, #tpu.memory_space<vmem>>, %arg13: memref<2x1x32xf32, #tpu.memory_space<vmem>>, %arg14: memref<2x1x32xf32, #tpu.memory_space<vmem>>, %arg15: memref<2x32x64xbf16, #tpu.memory_space<vmem>>, %arg16: memref<2x1x64xf32, #tpu.memory_space<vmem>>, %arg17: memref<2x64x32xbf16, #tpu.memory_space<vmem>>, %arg18: memref<2x1x32xf32, #tpu.memory_space<vmem>>, %arg19: memref<2x1x32xf32, #tpu.memory_space<vmem>>, %arg20: memref<2x1x32xf32, #tpu.memory_space<vmem>>, %arg21: memref<2x32xf32, #tpu.memory_space<vmem>>) attributes {dimension_semantics = [], scalar_prefetch = 0 : i64, scratch_operands = 0 : i64, tpu.core_type = #tpu.core_type<tc>} {
    %c0 = arith.constant 0 : index
    %c0_0 = arith.constant 0 : index
    %0 = vector.load %arg0[%c0, %c0_0] : memref<16x1xi32, #tpu.memory_space<vmem>>, vector<16x1xi32>
    %1 = tpu.iota {dimensions = array<i32: 1>} : vector<16x56xi32>
    %2 = vector.broadcast %0 : vector<16x1xi32> to vector<16x56xi32>
    %3 = arith.cmpi eq, %1, %2 : vector<16x56xi32>
    %4 = arith.extui %3 : vector<16x56xi1> to vector<16x56xi32>
    %5 = arith.sitofp %4 : vector<16x56xi32> to vector<16x56xf32>
    %c0_1 = arith.constant 0 : index
    %c0_2 = arith.constant 0 : index
    %6 = vector.load %arg1[%c0_1, %c0_2] : memref<56x32xf32, #tpu.memory_space<vmem>>, vector<56x32xf32>
    %cst = arith.constant dense<0.000000e+00> : vector<16x32xf32>
    %7 = tpu.matmul %5, %6, %cst {dimension_numbers = #tpu.dot_dimension_numbers<[1], [0], [0], [1], [0, 0, 1, 1], [], []>} : vector<16x56xf32>, vector<56x32xf32>, vector<16x32xf32> -> vector<16x32xf32>
    %c0_3 = arith.constant 0 : index
    %c0_4 = arith.constant 0 : index
    %8 = vector.load %arg2[%c0_3, %c0_4] : memref<16x32xf32, #tpu.memory_space<vmem>>, vector<16x32xf32>
    %9 = arith.addf %7, %8 : vector<16x32xf32>
    %c0_5 = arith.constant 0 : index
    %c0_6 = arith.constant 0 : index
    %10 = vector.load %arg3[%c0_5, %c0_6] : memref<32x4xf32, #tpu.memory_space<vmem>>, vector<32x4xf32>
    %c0_7 = arith.constant 0 : index
    %c0_8 = arith.constant 0 : index
    %11 = vector.load %arg4[%c0_7, %c0_8] : memref<4x32xf32, #tpu.memory_space<vmem>>, vector<4x32xf32>
    %12 = arith.truncf %9 : vector<16x32xf32> to vector<16x32xbf16>
    %c0_9 = arith.constant 0 : index
    %c0_10 = arith.constant 0 : index
    %c0_11 = arith.constant 0 : index
    %13 = vector.load %arg5[%c0_9, %c0_10, %c0_11] : memref<2x32x32xbf16, #tpu.memory_space<vmem>>, vector<1x32x32xbf16>
    %14 = vector.shape_cast %13 : vector<1x32x32xbf16> to vector<32x32xbf16>
    %cst_12 = arith.constant dense<0.000000e+00> : vector<16x32xf32>
    %15 = tpu.matmul %12, %14, %cst_12 {dimension_numbers = #tpu.dot_dimension_numbers<[1], [0], [0], [1], [0, 0, 1, 1], [], []>} : vector<16x32xbf16>, vector<32x32xbf16>, vector<16x32xf32> -> vector<16x32xf32>
    %c0_13 = arith.constant 0 : index
    %c0_14 = arith.constant 0 : index
    %c0_15 = arith.constant 0 : index
    %16 = vector.load %arg8[%c0_13, %c0_14, %c0_15] : memref<2x1x32xf32, #tpu.memory_space<vmem>>, vector<1x1x32xf32>
    %17 = vector.shape_cast %16 : vector<1x1x32xf32> to vector<1x32xf32>
    %18 = vector.broadcast %17 : vector<1x32xf32> to vector<16x32xf32>
    %19 = arith.addf %15, %18 : vector<16x32xf32>
    %c0_16 = arith.constant 0 : index
    %c0_17 = arith.constant 0 : index
    %c0_18 = arith.constant 0 : index
    %20 = vector.load %arg6[%c0_16, %c0_17, %c0_18] : memref<2x32x32xbf16, #tpu.memory_space<vmem>>, vector<1x32x32xbf16>
    %21 = vector.shape_cast %20 : vector<1x32x32xbf16> to vector<32x32xbf16>
    %cst_19 = arith.constant dense<0.000000e+00> : vector<16x32xf32>
    %22 = tpu.matmul %12, %21, %cst_19 {dimension_numbers = #tpu.dot_dimension_numbers<[1], [0], [0], [1], [0, 0, 1, 1], [], []>} : vector<16x32xbf16>, vector<32x32xbf16>, vector<16x32xf32> -> vector<16x32xf32>
    %c0_20 = arith.constant 0 : index
    %c0_21 = arith.constant 0 : index
    %c0_22 = arith.constant 0 : index
    %23 = vector.load %arg9[%c0_20, %c0_21, %c0_22] : memref<2x1x32xf32, #tpu.memory_space<vmem>>, vector<1x1x32xf32>
    %24 = vector.shape_cast %23 : vector<1x1x32xf32> to vector<1x32xf32>
    %25 = vector.broadcast %24 : vector<1x32xf32> to vector<16x32xf32>
    %26 = arith.addf %22, %25 : vector<16x32xf32>
    %c0_23 = arith.constant 0 : index
    %c0_24 = arith.constant 0 : index
    %c0_25 = arith.constant 0 : index
    %27 = vector.load %arg7[%c0_23, %c0_24, %c0_25] : memref<2x32x32xbf16, #tpu.memory_space<vmem>>, vector<1x32x32xbf16>
    %28 = vector.shape_cast %27 : vector<1x32x32xbf16> to vector<32x32xbf16>
    %cst_26 = arith.constant dense<0.000000e+00> : vector<16x32xf32>
    %29 = tpu.matmul %12, %28, %cst_26 {dimension_numbers = #tpu.dot_dimension_numbers<[1], [0], [0], [1], [0, 0, 1, 1], [], []>} : vector<16x32xbf16>, vector<32x32xbf16>, vector<16x32xf32> -> vector<16x32xf32>
    %c0_27 = arith.constant 0 : index
    %c0_28 = arith.constant 0 : index
    %c0_29 = arith.constant 0 : index
    %30 = vector.load %arg10[%c0_27, %c0_28, %c0_29] : memref<2x1x32xf32, #tpu.memory_space<vmem>>, vector<1x1x32xf32>
    %31 = vector.shape_cast %30 : vector<1x1x32xf32> to vector<1x32xf32>
    %32 = vector.broadcast %31 : vector<1x32xf32> to vector<16x32xf32>
    %33 = arith.addf %29, %32 : vector<16x32xf32>
    %34 = vector.extract_strided_slice %19 {offsets = [0, 0], sizes = [8, 32], strides = [1, 1]} : vector<16x32xf32> to vector<8x32xf32>
    %35 = vector.extract_strided_slice %19 {offsets = [8, 0], sizes = [8, 32], strides = [1, 1]} : vector<16x32xf32> to vector<8x32xf32>
    %36 = vector.extract_strided_slice %26 {offsets = [0, 0], sizes = [8, 32], strides = [1, 1]} : vector<16x32xf32> to vector<8x32xf32>
    %37 = vector.extract_strided_slice %26 {offsets = [8, 0], sizes = [8, 32], strides = [1, 1]} : vector<16x32xf32> to vector<8x32xf32>
    %38 = vector.extract_strided_slice %33 {offsets = [0, 0], sizes = [8, 32], strides = [1, 1]} : vector<16x32xf32> to vector<8x32xf32>
    %39 = vector.extract_strided_slice %33 {offsets = [8, 0], sizes = [8, 32], strides = [1, 1]} : vector<16x32xf32> to vector<8x32xf32>
    %40 = arith.mulf %34, %36 : vector<8x32xf32>
    %cst_30 = arith.constant dense<0.000000e+00> : vector<8x4xf32>
    %41 = tpu.matmul %40, %10, %cst_30 {dimension_numbers = #tpu.dot_dimension_numbers<[1], [0], [0], [1], [0, 0, 1, 1], [], []>} : vector<8x32xf32>, vector<32x4xf32>, vector<8x4xf32> -> vector<8x4xf32>
    %42 = arith.mulf %34, %37 : vector<8x32xf32>
    %cst_31 = arith.constant dense<0.000000e+00> : vector<8x4xf32>
    %43 = tpu.matmul %42, %10, %cst_31 {dimension_numbers = #tpu.dot_dimension_numbers<[1], [0], [0], [1], [0, 0, 1, 1], [], []>} : vector<8x32xf32>, vector<32x4xf32>, vector<8x4xf32> -> vector<8x4xf32>
    %44 = arith.maximumf %41, %43 : vector<8x4xf32>
    %45 = arith.subf %41, %44 : vector<8x4xf32>
    %46 = math.exp %45 : vector<8x4xf32>
    %47 = arith.subf %43, %44 : vector<8x4xf32>
    %48 = math.exp %47 : vector<8x4xf32>
    %49 = arith.addf %46, %48 : vector<8x4xf32>
    %cst_32 = arith.constant 1.000000e+00 : f32
    %50 = vector.broadcast %cst_32 : f32 to vector<8x4xf32>
    %51 = arith.divf %50, %49 : vector<8x4xf32>
    %52 = arith.mulf %46, %51 : vector<8x4xf32>
    %cst_33 = arith.constant dense<0.000000e+00> : vector<8x32xf32>
    %53 = tpu.matmul %52, %11, %cst_33 {dimension_numbers = #tpu.dot_dimension_numbers<[1], [0], [0], [1], [0, 0, 1, 1], [], []>} : vector<8x4xf32>, vector<4x32xf32>, vector<8x32xf32> -> vector<8x32xf32>
    %54 = arith.mulf %53, %38 : vector<8x32xf32>
    %55 = arith.mulf %48, %51 : vector<8x4xf32>
    %cst_34 = arith.constant dense<0.000000e+00> : vector<8x32xf32>
    %56 = tpu.matmul %55, %11, %cst_34 {dimension_numbers = #tpu.dot_dimension_numbers<[1], [0], [0], [1], [0, 0, 1, 1], [], []>} : vector<8x4xf32>, vector<4x32xf32>, vector<8x32xf32> -> vector<8x32xf32>
    %57 = arith.mulf %56, %39 : vector<8x32xf32>
    %58 = arith.addf %54, %57 : vector<8x32xf32>
    %59 = arith.mulf %35, %36 : vector<8x32xf32>
    %cst_35 = arith.constant dense<0.000000e+00> : vector<8x4xf32>
    %60 = tpu.matmul %59, %10, %cst_35 {dimension_numbers = #tpu.dot_dimension_numbers<[1], [0], [0], [1], [0, 0, 1, 1], [], []>} : vector<8x32xf32>, vector<32x4xf32>, vector<8x4xf32> -> vector<8x4xf32>
    %61 = arith.mulf %35, %37 : vector<8x32xf32>
    %cst_36 = arith.constant dense<0.000000e+00> : vector<8x4xf32>
    %62 = tpu.matmul %61, %10, %cst_36 {dimension_numbers = #tpu.dot_dimension_numbers<[1], [0], [0], [1], [0, 0, 1, 1], [], []>} : vector<8x32xf32>, vector<32x4xf32>, vector<8x4xf32> -> vector<8x4xf32>
    %63 = arith.maximumf %60, %62 : vector<8x4xf32>
    %64 = arith.subf %60, %63 : vector<8x4xf32>
    %65 = math.exp %64 : vector<8x4xf32>
    %66 = arith.subf %62, %63 : vector<8x4xf32>
    %67 = math.exp %66 : vector<8x4xf32>
    %68 = arith.addf %65, %67 : vector<8x4xf32>
    %cst_37 = arith.constant 1.000000e+00 : f32
    %69 = vector.broadcast %cst_37 : f32 to vector<8x4xf32>
    %70 = arith.divf %69, %68 : vector<8x4xf32>
    %71 = arith.mulf %65, %70 : vector<8x4xf32>
    %cst_38 = arith.constant dense<0.000000e+00> : vector<8x32xf32>
    %72 = tpu.matmul %71, %11, %cst_38 {dimension_numbers = #tpu.dot_dimension_numbers<[1], [0], [0], [1], [0, 0, 1, 1], [], []>} : vector<8x4xf32>, vector<4x32xf32>, vector<8x32xf32> -> vector<8x32xf32>
    %73 = arith.mulf %72, %38 : vector<8x32xf32>
    %74 = arith.mulf %67, %70 : vector<8x4xf32>
    %cst_39 = arith.constant dense<0.000000e+00> : vector<8x32xf32>
    %75 = tpu.matmul %74, %11, %cst_39 {dimension_numbers = #tpu.dot_dimension_numbers<[1], [0], [0], [1], [0, 0, 1, 1], [], []>} : vector<8x4xf32>, vector<4x32xf32>, vector<8x32xf32> -> vector<8x32xf32>
    %76 = arith.mulf %75, %39 : vector<8x32xf32>
    %77 = arith.addf %73, %76 : vector<8x32xf32>
    %78 = tpu.concatenate %58, %77 in 0 : vector<8x32xf32>, vector<8x32xf32> -> vector<16x32xf32>
    %79 = arith.truncf %78 : vector<16x32xf32> to vector<16x32xbf16>
    %c0_40 = arith.constant 0 : index
    %c0_41 = arith.constant 0 : index
    %c0_42 = arith.constant 0 : index
    %80 = vector.load %arg11[%c0_40, %c0_41, %c0_42] : memref<2x32x32xbf16, #tpu.memory_space<vmem>>, vector<1x32x32xbf16>
    %81 = vector.shape_cast %80 : vector<1x32x32xbf16> to vector<32x32xbf16>
    %cst_43 = arith.constant dense<0.000000e+00> : vector<16x32xf32>
    %82 = tpu.matmul %79, %81, %cst_43 {dimension_numbers = #tpu.dot_dimension_numbers<[1], [0], [0], [1], [0, 0, 1, 1], [], []>} : vector<16x32xbf16>, vector<32x32xbf16>, vector<16x32xf32> -> vector<16x32xf32>
    %c0_44 = arith.constant 0 : index
    %c0_45 = arith.constant 0 : index
    %c0_46 = arith.constant 0 : index
    %83 = vector.load %arg12[%c0_44, %c0_45, %c0_46] : memref<2x1x32xf32, #tpu.memory_space<vmem>>, vector<1x1x32xf32>
    %84 = vector.shape_cast %83 : vector<1x1x32xf32> to vector<1x32xf32>
    %85 = vector.broadcast %84 : vector<1x32xf32> to vector<16x32xf32>
    %86 = arith.addf %82, %85 : vector<16x32xf32>
    %87 = arith.addf %9, %86 : vector<16x32xf32>
    %c0_47 = arith.constant 0 : index
    %c0_48 = arith.constant 0 : index
    %c0_49 = arith.constant 0 : index
    %88 = vector.load %arg13[%c0_47, %c0_48, %c0_49] : memref<2x1x32xf32, #tpu.memory_space<vmem>>, vector<1x1x32xf32>
    %89 = vector.shape_cast %88 : vector<1x1x32xf32> to vector<1x32xf32>
    %c0_50 = arith.constant 0 : index
    %c0_51 = arith.constant 0 : index
    %c0_52 = arith.constant 0 : index
    %90 = vector.load %arg14[%c0_50, %c0_51, %c0_52] : memref<2x1x32xf32, #tpu.memory_space<vmem>>, vector<1x1x32xf32>
    %91 = vector.shape_cast %90 : vector<1x1x32xf32> to vector<1x32xf32>
    %cst_53 = arith.constant dense<0.000000e+00> : vector<16xf32>
    %92 = vector.multi_reduction <add>, %87, %cst_53 [1] : vector<16x32xf32> to vector<16xf32>
    %93 = vector.shape_cast %92 : vector<16xf32> to vector<16x1xf32>
    %cst_54 = arith.constant 3.200000e+01 : f32
    %94 = vector.broadcast %cst_54 : f32 to vector<16x1xf32>
    %95 = arith.divf %93, %94 : vector<16x1xf32>
    %96 = vector.broadcast %95 : vector<16x1xf32> to vector<16x32xf32>
    %97 = arith.subf %87, %96 : vector<16x32xf32>
    %98 = arith.mulf %97, %97 : vector<16x32xf32>
    %cst_55 = arith.constant dense<0.000000e+00> : vector<16xf32>
    %99 = vector.multi_reduction <add>, %98, %cst_55 [1] : vector<16x32xf32> to vector<16xf32>
    %100 = vector.shape_cast %99 : vector<16xf32> to vector<16x1xf32>
    %cst_56 = arith.constant 3.200000e+01 : f32
    %101 = vector.broadcast %cst_56 : f32 to vector<16x1xf32>
    %102 = arith.divf %100, %101 : vector<16x1xf32>
    %cst_57 = arith.constant 9.99999974E-6 : f32
    %103 = vector.broadcast %cst_57 : f32 to vector<16x1xf32>
    %104 = arith.addf %102, %103 : vector<16x1xf32>
    %105 = math.rsqrt %104 : vector<16x1xf32>
    %106 = vector.broadcast %105 : vector<16x1xf32> to vector<16x32xf32>
    %107 = arith.mulf %97, %106 : vector<16x32xf32>
    %108 = vector.broadcast %89 : vector<1x32xf32> to vector<16x32xf32>
    %109 = arith.mulf %107, %108 : vector<16x32xf32>
    %110 = vector.broadcast %91 : vector<1x32xf32> to vector<16x32xf32>
    %111 = arith.addf %109, %110 : vector<16x32xf32>
    %112 = arith.truncf %111 : vector<16x32xf32> to vector<16x32xbf16>
    %c0_58 = arith.constant 0 : index
    %c0_59 = arith.constant 0 : index
    %c0_60 = arith.constant 0 : index
    %113 = vector.load %arg15[%c0_58, %c0_59, %c0_60] : memref<2x32x64xbf16, #tpu.memory_space<vmem>>, vector<1x32x64xbf16>
    %114 = vector.shape_cast %113 : vector<1x32x64xbf16> to vector<32x64xbf16>
    %cst_61 = arith.constant dense<0.000000e+00> : vector<16x64xf32>
    %115 = tpu.matmul %112, %114, %cst_61 {dimension_numbers = #tpu.dot_dimension_numbers<[1], [0], [0], [1], [0, 0, 1, 1], [], []>} : vector<16x32xbf16>, vector<32x64xbf16>, vector<16x64xf32> -> vector<16x64xf32>
    %c0_62 = arith.constant 0 : index
    %c0_63 = arith.constant 0 : index
    %c0_64 = arith.constant 0 : index
    %116 = vector.load %arg16[%c0_62, %c0_63, %c0_64] : memref<2x1x64xf32, #tpu.memory_space<vmem>>, vector<1x1x64xf32>
    %117 = vector.shape_cast %116 : vector<1x1x64xf32> to vector<1x64xf32>
    %118 = vector.broadcast %117 : vector<1x64xf32> to vector<16x64xf32>
    %119 = arith.addf %115, %118 : vector<16x64xf32>
    %cst_65 = arith.constant 0.000000e+00 : f32
    %120 = vector.broadcast %cst_65 : f32 to vector<16x64xf32>
    %121 = arith.maximumf %119, %120 : vector<16x64xf32>
    %122 = arith.truncf %121 : vector<16x64xf32> to vector<16x64xbf16>
    %c0_66 = arith.constant 0 : index
    %c0_67 = arith.constant 0 : index
    %c0_68 = arith.constant 0 : index
    %123 = vector.load %arg17[%c0_66, %c0_67, %c0_68] : memref<2x64x32xbf16, #tpu.memory_space<vmem>>, vector<1x64x32xbf16>
    %124 = vector.shape_cast %123 : vector<1x64x32xbf16> to vector<64x32xbf16>
    %cst_69 = arith.constant dense<0.000000e+00> : vector<16x32xf32>
    %125 = tpu.matmul %122, %124, %cst_69 {dimension_numbers = #tpu.dot_dimension_numbers<[1], [0], [0], [1], [0, 0, 1, 1], [], []>} : vector<16x64xbf16>, vector<64x32xbf16>, vector<16x32xf32> -> vector<16x32xf32>
    %c0_70 = arith.constant 0 : index
    %c0_71 = arith.constant 0 : index
    %c0_72 = arith.constant 0 : index
    %126 = vector.load %arg18[%c0_70, %c0_71, %c0_72] : memref<2x1x32xf32, #tpu.memory_space<vmem>>, vector<1x1x32xf32>
    %127 = vector.shape_cast %126 : vector<1x1x32xf32> to vector<1x32xf32>
    %128 = vector.broadcast %127 : vector<1x32xf32> to vector<16x32xf32>
    %129 = arith.addf %125, %128 : vector<16x32xf32>
    %130 = arith.addf %111, %129 : vector<16x32xf32>
    %c0_73 = arith.constant 0 : index
    %c0_74 = arith.constant 0 : index
    %c0_75 = arith.constant 0 : index
    %131 = vector.load %arg19[%c0_73, %c0_74, %c0_75] : memref<2x1x32xf32, #tpu.memory_space<vmem>>, vector<1x1x32xf32>
    %132 = vector.shape_cast %131 : vector<1x1x32xf32> to vector<1x32xf32>
    %c0_76 = arith.constant 0 : index
    %c0_77 = arith.constant 0 : index
    %c0_78 = arith.constant 0 : index
    %133 = vector.load %arg20[%c0_76, %c0_77, %c0_78] : memref<2x1x32xf32, #tpu.memory_space<vmem>>, vector<1x1x32xf32>
    %134 = vector.shape_cast %133 : vector<1x1x32xf32> to vector<1x32xf32>
    %cst_79 = arith.constant dense<0.000000e+00> : vector<16xf32>
    %135 = vector.multi_reduction <add>, %130, %cst_79 [1] : vector<16x32xf32> to vector<16xf32>
    %136 = vector.shape_cast %135 : vector<16xf32> to vector<16x1xf32>
    %cst_80 = arith.constant 3.200000e+01 : f32
    %137 = vector.broadcast %cst_80 : f32 to vector<16x1xf32>
    %138 = arith.divf %136, %137 : vector<16x1xf32>
    %139 = vector.broadcast %138 : vector<16x1xf32> to vector<16x32xf32>
    %140 = arith.subf %130, %139 : vector<16x32xf32>
    %141 = arith.mulf %140, %140 : vector<16x32xf32>
    %cst_81 = arith.constant dense<0.000000e+00> : vector<16xf32>
    %142 = vector.multi_reduction <add>, %141, %cst_81 [1] : vector<16x32xf32> to vector<16xf32>
    %143 = vector.shape_cast %142 : vector<16xf32> to vector<16x1xf32>
    %cst_82 = arith.constant 3.200000e+01 : f32
    %144 = vector.broadcast %cst_82 : f32 to vector<16x1xf32>
    %145 = arith.divf %143, %144 : vector<16x1xf32>
    %cst_83 = arith.constant 9.99999974E-6 : f32
    %146 = vector.broadcast %cst_83 : f32 to vector<16x1xf32>
    %147 = arith.addf %145, %146 : vector<16x1xf32>
    %148 = math.rsqrt %147 : vector<16x1xf32>
    %149 = vector.broadcast %148 : vector<16x1xf32> to vector<16x32xf32>
    %150 = arith.mulf %140, %149 : vector<16x32xf32>
    %151 = vector.broadcast %132 : vector<1x32xf32> to vector<16x32xf32>
    %152 = arith.mulf %150, %151 : vector<16x32xf32>
    %153 = vector.broadcast %134 : vector<1x32xf32> to vector<16x32xf32>
    %154 = arith.addf %152, %153 : vector<16x32xf32>
    %155 = arith.truncf %154 : vector<16x32xf32> to vector<16x32xbf16>
    %c1 = arith.constant 1 : index
    %c0_84 = arith.constant 0 : index
    %c0_85 = arith.constant 0 : index
    %156 = vector.load %arg5[%c1, %c0_84, %c0_85] : memref<2x32x32xbf16, #tpu.memory_space<vmem>>, vector<1x32x32xbf16>
    %157 = vector.shape_cast %156 : vector<1x32x32xbf16> to vector<32x32xbf16>
    %cst_86 = arith.constant dense<0.000000e+00> : vector<16x32xf32>
    %158 = tpu.matmul %155, %157, %cst_86 {dimension_numbers = #tpu.dot_dimension_numbers<[1], [0], [0], [1], [0, 0, 1, 1], [], []>} : vector<16x32xbf16>, vector<32x32xbf16>, vector<16x32xf32> -> vector<16x32xf32>
    %c1_87 = arith.constant 1 : index
    %c0_88 = arith.constant 0 : index
    %c0_89 = arith.constant 0 : index
    %159 = vector.load %arg8[%c1_87, %c0_88, %c0_89] : memref<2x1x32xf32, #tpu.memory_space<vmem>>, vector<1x1x32xf32>
    %160 = vector.shape_cast %159 : vector<1x1x32xf32> to vector<1x32xf32>
    %161 = vector.broadcast %160 : vector<1x32xf32> to vector<16x32xf32>
    %162 = arith.addf %158, %161 : vector<16x32xf32>
    %c1_90 = arith.constant 1 : index
    %c0_91 = arith.constant 0 : index
    %c0_92 = arith.constant 0 : index
    %163 = vector.load %arg6[%c1_90, %c0_91, %c0_92] : memref<2x32x32xbf16, #tpu.memory_space<vmem>>, vector<1x32x32xbf16>
    %164 = vector.shape_cast %163 : vector<1x32x32xbf16> to vector<32x32xbf16>
    %cst_93 = arith.constant dense<0.000000e+00> : vector<16x32xf32>
    %165 = tpu.matmul %155, %164, %cst_93 {dimension_numbers = #tpu.dot_dimension_numbers<[1], [0], [0], [1], [0, 0, 1, 1], [], []>} : vector<16x32xbf16>, vector<32x32xbf16>, vector<16x32xf32> -> vector<16x32xf32>
    %c1_94 = arith.constant 1 : index
    %c0_95 = arith.constant 0 : index
    %c0_96 = arith.constant 0 : index
    %166 = vector.load %arg9[%c1_94, %c0_95, %c0_96] : memref<2x1x32xf32, #tpu.memory_space<vmem>>, vector<1x1x32xf32>
    %167 = vector.shape_cast %166 : vector<1x1x32xf32> to vector<1x32xf32>
    %168 = vector.broadcast %167 : vector<1x32xf32> to vector<16x32xf32>
    %169 = arith.addf %165, %168 : vector<16x32xf32>
    %c1_97 = arith.constant 1 : index
    %c0_98 = arith.constant 0 : index
    %c0_99 = arith.constant 0 : index
    %170 = vector.load %arg7[%c1_97, %c0_98, %c0_99] : memref<2x32x32xbf16, #tpu.memory_space<vmem>>, vector<1x32x32xbf16>
    %171 = vector.shape_cast %170 : vector<1x32x32xbf16> to vector<32x32xbf16>
    %cst_100 = arith.constant dense<0.000000e+00> : vector<16x32xf32>
    %172 = tpu.matmul %155, %171, %cst_100 {dimension_numbers = #tpu.dot_dimension_numbers<[1], [0], [0], [1], [0, 0, 1, 1], [], []>} : vector<16x32xbf16>, vector<32x32xbf16>, vector<16x32xf32> -> vector<16x32xf32>
    %c1_101 = arith.constant 1 : index
    %c0_102 = arith.constant 0 : index
    %c0_103 = arith.constant 0 : index
    %173 = vector.load %arg10[%c1_101, %c0_102, %c0_103] : memref<2x1x32xf32, #tpu.memory_space<vmem>>, vector<1x1x32xf32>
    %174 = vector.shape_cast %173 : vector<1x1x32xf32> to vector<1x32xf32>
    %175 = vector.broadcast %174 : vector<1x32xf32> to vector<16x32xf32>
    %176 = arith.addf %172, %175 : vector<16x32xf32>
    %177 = vector.extract_strided_slice %162 {offsets = [0, 0], sizes = [8, 32], strides = [1, 1]} : vector<16x32xf32> to vector<8x32xf32>
    %178 = vector.extract_strided_slice %162 {offsets = [8, 0], sizes = [8, 32], strides = [1, 1]} : vector<16x32xf32> to vector<8x32xf32>
    %179 = vector.extract_strided_slice %169 {offsets = [0, 0], sizes = [8, 32], strides = [1, 1]} : vector<16x32xf32> to vector<8x32xf32>
    %180 = vector.extract_strided_slice %169 {offsets = [8, 0], sizes = [8, 32], strides = [1, 1]} : vector<16x32xf32> to vector<8x32xf32>
    %181 = vector.extract_strided_slice %176 {offsets = [0, 0], sizes = [8, 32], strides = [1, 1]} : vector<16x32xf32> to vector<8x32xf32>
    %182 = vector.extract_strided_slice %176 {offsets = [8, 0], sizes = [8, 32], strides = [1, 1]} : vector<16x32xf32> to vector<8x32xf32>
    %183 = arith.mulf %177, %179 : vector<8x32xf32>
    %cst_104 = arith.constant dense<0.000000e+00> : vector<8x4xf32>
    %184 = tpu.matmul %183, %10, %cst_104 {dimension_numbers = #tpu.dot_dimension_numbers<[1], [0], [0], [1], [0, 0, 1, 1], [], []>} : vector<8x32xf32>, vector<32x4xf32>, vector<8x4xf32> -> vector<8x4xf32>
    %185 = arith.mulf %177, %180 : vector<8x32xf32>
    %cst_105 = arith.constant dense<0.000000e+00> : vector<8x4xf32>
    %186 = tpu.matmul %185, %10, %cst_105 {dimension_numbers = #tpu.dot_dimension_numbers<[1], [0], [0], [1], [0, 0, 1, 1], [], []>} : vector<8x32xf32>, vector<32x4xf32>, vector<8x4xf32> -> vector<8x4xf32>
    %187 = arith.maximumf %184, %186 : vector<8x4xf32>
    %188 = arith.subf %184, %187 : vector<8x4xf32>
    %189 = math.exp %188 : vector<8x4xf32>
    %190 = arith.subf %186, %187 : vector<8x4xf32>
    %191 = math.exp %190 : vector<8x4xf32>
    %192 = arith.addf %189, %191 : vector<8x4xf32>
    %cst_106 = arith.constant 1.000000e+00 : f32
    %193 = vector.broadcast %cst_106 : f32 to vector<8x4xf32>
    %194 = arith.divf %193, %192 : vector<8x4xf32>
    %195 = arith.mulf %189, %194 : vector<8x4xf32>
    %cst_107 = arith.constant dense<0.000000e+00> : vector<8x32xf32>
    %196 = tpu.matmul %195, %11, %cst_107 {dimension_numbers = #tpu.dot_dimension_numbers<[1], [0], [0], [1], [0, 0, 1, 1], [], []>} : vector<8x4xf32>, vector<4x32xf32>, vector<8x32xf32> -> vector<8x32xf32>
    %197 = arith.mulf %196, %181 : vector<8x32xf32>
    %198 = arith.mulf %191, %194 : vector<8x4xf32>
    %cst_108 = arith.constant dense<0.000000e+00> : vector<8x32xf32>
    %199 = tpu.matmul %198, %11, %cst_108 {dimension_numbers = #tpu.dot_dimension_numbers<[1], [0], [0], [1], [0, 0, 1, 1], [], []>} : vector<8x4xf32>, vector<4x32xf32>, vector<8x32xf32> -> vector<8x32xf32>
    %200 = arith.mulf %199, %182 : vector<8x32xf32>
    %201 = arith.addf %197, %200 : vector<8x32xf32>
    %202 = arith.mulf %178, %179 : vector<8x32xf32>
    %cst_109 = arith.constant dense<0.000000e+00> : vector<8x4xf32>
    %203 = tpu.matmul %202, %10, %cst_109 {dimension_numbers = #tpu.dot_dimension_numbers<[1], [0], [0], [1], [0, 0, 1, 1], [], []>} : vector<8x32xf32>, vector<32x4xf32>, vector<8x4xf32> -> vector<8x4xf32>
    %204 = arith.mulf %178, %180 : vector<8x32xf32>
    %cst_110 = arith.constant dense<0.000000e+00> : vector<8x4xf32>
    %205 = tpu.matmul %204, %10, %cst_110 {dimension_numbers = #tpu.dot_dimension_numbers<[1], [0], [0], [1], [0, 0, 1, 1], [], []>} : vector<8x32xf32>, vector<32x4xf32>, vector<8x4xf32> -> vector<8x4xf32>
    %206 = arith.maximumf %203, %205 : vector<8x4xf32>
    %207 = arith.subf %203, %206 : vector<8x4xf32>
    %208 = math.exp %207 : vector<8x4xf32>
    %209 = arith.subf %205, %206 : vector<8x4xf32>
    %210 = math.exp %209 : vector<8x4xf32>
    %211 = arith.addf %208, %210 : vector<8x4xf32>
    %cst_111 = arith.constant 1.000000e+00 : f32
    %212 = vector.broadcast %cst_111 : f32 to vector<8x4xf32>
    %213 = arith.divf %212, %211 : vector<8x4xf32>
    %214 = arith.mulf %208, %213 : vector<8x4xf32>
    %cst_112 = arith.constant dense<0.000000e+00> : vector<8x32xf32>
    %215 = tpu.matmul %214, %11, %cst_112 {dimension_numbers = #tpu.dot_dimension_numbers<[1], [0], [0], [1], [0, 0, 1, 1], [], []>} : vector<8x4xf32>, vector<4x32xf32>, vector<8x32xf32> -> vector<8x32xf32>
    %216 = arith.mulf %215, %181 : vector<8x32xf32>
    %217 = arith.mulf %210, %213 : vector<8x4xf32>
    %cst_113 = arith.constant dense<0.000000e+00> : vector<8x32xf32>
    %218 = tpu.matmul %217, %11, %cst_113 {dimension_numbers = #tpu.dot_dimension_numbers<[1], [0], [0], [1], [0, 0, 1, 1], [], []>} : vector<8x4xf32>, vector<4x32xf32>, vector<8x32xf32> -> vector<8x32xf32>
    %219 = arith.mulf %218, %182 : vector<8x32xf32>
    %220 = arith.addf %216, %219 : vector<8x32xf32>
    %221 = tpu.concatenate %201, %220 in 0 : vector<8x32xf32>, vector<8x32xf32> -> vector<16x32xf32>
    %222 = arith.truncf %221 : vector<16x32xf32> to vector<16x32xbf16>
    %c1_114 = arith.constant 1 : index
    %c0_115 = arith.constant 0 : index
    %c0_116 = arith.constant 0 : index
    %223 = vector.load %arg11[%c1_114, %c0_115, %c0_116] : memref<2x32x32xbf16, #tpu.memory_space<vmem>>, vector<1x32x32xbf16>
    %224 = vector.shape_cast %223 : vector<1x32x32xbf16> to vector<32x32xbf16>
    %cst_117 = arith.constant dense<0.000000e+00> : vector<16x32xf32>
    %225 = tpu.matmul %222, %224, %cst_117 {dimension_numbers = #tpu.dot_dimension_numbers<[1], [0], [0], [1], [0, 0, 1, 1], [], []>} : vector<16x32xbf16>, vector<32x32xbf16>, vector<16x32xf32> -> vector<16x32xf32>
    %c1_118 = arith.constant 1 : index
    %c0_119 = arith.constant 0 : index
    %c0_120 = arith.constant 0 : index
    %226 = vector.load %arg12[%c1_118, %c0_119, %c0_120] : memref<2x1x32xf32, #tpu.memory_space<vmem>>, vector<1x1x32xf32>
    %227 = vector.shape_cast %226 : vector<1x1x32xf32> to vector<1x32xf32>
    %228 = vector.broadcast %227 : vector<1x32xf32> to vector<16x32xf32>
    %229 = arith.addf %225, %228 : vector<16x32xf32>
    %230 = arith.addf %154, %229 : vector<16x32xf32>
    %c1_121 = arith.constant 1 : index
    %c0_122 = arith.constant 0 : index
    %c0_123 = arith.constant 0 : index
    %231 = vector.load %arg13[%c1_121, %c0_122, %c0_123] : memref<2x1x32xf32, #tpu.memory_space<vmem>>, vector<1x1x32xf32>
    %232 = vector.shape_cast %231 : vector<1x1x32xf32> to vector<1x32xf32>
    %c1_124 = arith.constant 1 : index
    %c0_125 = arith.constant 0 : index
    %c0_126 = arith.constant 0 : index
    %233 = vector.load %arg14[%c1_124, %c0_125, %c0_126] : memref<2x1x32xf32, #tpu.memory_space<vmem>>, vector<1x1x32xf32>
    %234 = vector.shape_cast %233 : vector<1x1x32xf32> to vector<1x32xf32>
    %cst_127 = arith.constant dense<0.000000e+00> : vector<16xf32>
    %235 = vector.multi_reduction <add>, %230, %cst_127 [1] : vector<16x32xf32> to vector<16xf32>
    %236 = vector.shape_cast %235 : vector<16xf32> to vector<16x1xf32>
    %cst_128 = arith.constant 3.200000e+01 : f32
    %237 = vector.broadcast %cst_128 : f32 to vector<16x1xf32>
    %238 = arith.divf %236, %237 : vector<16x1xf32>
    %239 = vector.broadcast %238 : vector<16x1xf32> to vector<16x32xf32>
    %240 = arith.subf %230, %239 : vector<16x32xf32>
    %241 = arith.mulf %240, %240 : vector<16x32xf32>
    %cst_129 = arith.constant dense<0.000000e+00> : vector<16xf32>
    %242 = vector.multi_reduction <add>, %241, %cst_129 [1] : vector<16x32xf32> to vector<16xf32>
    %243 = vector.shape_cast %242 : vector<16xf32> to vector<16x1xf32>
    %cst_130 = arith.constant 3.200000e+01 : f32
    %244 = vector.broadcast %cst_130 : f32 to vector<16x1xf32>
    %245 = arith.divf %243, %244 : vector<16x1xf32>
    %cst_131 = arith.constant 9.99999974E-6 : f32
    %246 = vector.broadcast %cst_131 : f32 to vector<16x1xf32>
    %247 = arith.addf %245, %246 : vector<16x1xf32>
    %248 = math.rsqrt %247 : vector<16x1xf32>
    %249 = vector.broadcast %248 : vector<16x1xf32> to vector<16x32xf32>
    %250 = arith.mulf %240, %249 : vector<16x32xf32>
    %251 = vector.broadcast %232 : vector<1x32xf32> to vector<16x32xf32>
    %252 = arith.mulf %250, %251 : vector<16x32xf32>
    %253 = vector.broadcast %234 : vector<1x32xf32> to vector<16x32xf32>
    %254 = arith.addf %252, %253 : vector<16x32xf32>
    %255 = arith.truncf %254 : vector<16x32xf32> to vector<16x32xbf16>
    %c1_132 = arith.constant 1 : index
    %c0_133 = arith.constant 0 : index
    %c0_134 = arith.constant 0 : index
    %256 = vector.load %arg15[%c1_132, %c0_133, %c0_134] : memref<2x32x64xbf16, #tpu.memory_space<vmem>>, vector<1x32x64xbf16>
    %257 = vector.shape_cast %256 : vector<1x32x64xbf16> to vector<32x64xbf16>
    %cst_135 = arith.constant dense<0.000000e+00> : vector<16x64xf32>
    %258 = tpu.matmul %255, %257, %cst_135 {dimension_numbers = #tpu.dot_dimension_numbers<[1], [0], [0], [1], [0, 0, 1, 1], [], []>} : vector<16x32xbf16>, vector<32x64xbf16>, vector<16x64xf32> -> vector<16x64xf32>
    %c1_136 = arith.constant 1 : index
    %c0_137 = arith.constant 0 : index
    %c0_138 = arith.constant 0 : index
    %259 = vector.load %arg16[%c1_136, %c0_137, %c0_138] : memref<2x1x64xf32, #tpu.memory_space<vmem>>, vector<1x1x64xf32>
    %260 = vector.shape_cast %259 : vector<1x1x64xf32> to vector<1x64xf32>
    %261 = vector.broadcast %260 : vector<1x64xf32> to vector<16x64xf32>
    %262 = arith.addf %258, %261 : vector<16x64xf32>
    %cst_139 = arith.constant 0.000000e+00 : f32
    %263 = vector.broadcast %cst_139 : f32 to vector<16x64xf32>
    %264 = arith.maximumf %262, %263 : vector<16x64xf32>
    %265 = arith.truncf %264 : vector<16x64xf32> to vector<16x64xbf16>
    %c1_140 = arith.constant 1 : index
    %c0_141 = arith.constant 0 : index
    %c0_142 = arith.constant 0 : index
    %266 = vector.load %arg17[%c1_140, %c0_141, %c0_142] : memref<2x64x32xbf16, #tpu.memory_space<vmem>>, vector<1x64x32xbf16>
    %267 = vector.shape_cast %266 : vector<1x64x32xbf16> to vector<64x32xbf16>
    %cst_143 = arith.constant dense<0.000000e+00> : vector<16x32xf32>
    %268 = tpu.matmul %265, %267, %cst_143 {dimension_numbers = #tpu.dot_dimension_numbers<[1], [0], [0], [1], [0, 0, 1, 1], [], []>} : vector<16x64xbf16>, vector<64x32xbf16>, vector<16x32xf32> -> vector<16x32xf32>
    %c1_144 = arith.constant 1 : index
    %c0_145 = arith.constant 0 : index
    %c0_146 = arith.constant 0 : index
    %269 = vector.load %arg18[%c1_144, %c0_145, %c0_146] : memref<2x1x32xf32, #tpu.memory_space<vmem>>, vector<1x1x32xf32>
    %270 = vector.shape_cast %269 : vector<1x1x32xf32> to vector<1x32xf32>
    %271 = vector.broadcast %270 : vector<1x32xf32> to vector<16x32xf32>
    %272 = arith.addf %268, %271 : vector<16x32xf32>
    %273 = arith.addf %254, %272 : vector<16x32xf32>
    %c1_147 = arith.constant 1 : index
    %c0_148 = arith.constant 0 : index
    %c0_149 = arith.constant 0 : index
    %274 = vector.load %arg19[%c1_147, %c0_148, %c0_149] : memref<2x1x32xf32, #tpu.memory_space<vmem>>, vector<1x1x32xf32>
    %275 = vector.shape_cast %274 : vector<1x1x32xf32> to vector<1x32xf32>
    %c1_150 = arith.constant 1 : index
    %c0_151 = arith.constant 0 : index
    %c0_152 = arith.constant 0 : index
    %276 = vector.load %arg20[%c1_150, %c0_151, %c0_152] : memref<2x1x32xf32, #tpu.memory_space<vmem>>, vector<1x1x32xf32>
    %277 = vector.shape_cast %276 : vector<1x1x32xf32> to vector<1x32xf32>
    %cst_153 = arith.constant dense<0.000000e+00> : vector<16xf32>
    %278 = vector.multi_reduction <add>, %273, %cst_153 [1] : vector<16x32xf32> to vector<16xf32>
    %279 = vector.shape_cast %278 : vector<16xf32> to vector<16x1xf32>
    %cst_154 = arith.constant 3.200000e+01 : f32
    %280 = vector.broadcast %cst_154 : f32 to vector<16x1xf32>
    %281 = arith.divf %279, %280 : vector<16x1xf32>
    %282 = vector.broadcast %281 : vector<16x1xf32> to vector<16x32xf32>
    %283 = arith.subf %273, %282 : vector<16x32xf32>
    %284 = arith.mulf %283, %283 : vector<16x32xf32>
    %cst_155 = arith.constant dense<0.000000e+00> : vector<16xf32>
    %285 = vector.multi_reduction <add>, %284, %cst_155 [1] : vector<16x32xf32> to vector<16xf32>
    %286 = vector.shape_cast %285 : vector<16xf32> to vector<16x1xf32>
    %cst_156 = arith.constant 3.200000e+01 : f32
    %287 = vector.broadcast %cst_156 : f32 to vector<16x1xf32>
    %288 = arith.divf %286, %287 : vector<16x1xf32>
    %cst_157 = arith.constant 9.99999974E-6 : f32
    %289 = vector.broadcast %cst_157 : f32 to vector<16x1xf32>
    %290 = arith.addf %288, %289 : vector<16x1xf32>
    %291 = math.rsqrt %290 : vector<16x1xf32>
    %292 = vector.broadcast %291 : vector<16x1xf32> to vector<16x32xf32>
    %293 = arith.mulf %283, %292 : vector<16x32xf32>
    %294 = vector.broadcast %275 : vector<1x32xf32> to vector<16x32xf32>
    %295 = arith.mulf %293, %294 : vector<16x32xf32>
    %296 = vector.broadcast %277 : vector<1x32xf32> to vector<16x32xf32>
    %297 = arith.addf %295, %296 : vector<16x32xf32>
    %298 = vector.extract_strided_slice %297 {offsets = [0, 0], sizes = [8, 32], strides = [1, 1]} : vector<16x32xf32> to vector<8x32xf32>
    %cst_158 = arith.constant dense<0.000000e+00> : vector<32xf32>
    %299 = vector.multi_reduction <add>, %298, %cst_158 [0] : vector<8x32xf32> to vector<32xf32>
    %300 = vector.shape_cast %299 : vector<32xf32> to vector<1x32xf32>
    %cst_159 = arith.constant 8.000000e+00 : f32
    %301 = vector.broadcast %cst_159 : f32 to vector<1x32xf32>
    %302 = arith.divf %300, %301 : vector<1x32xf32>
    %303 = vector.extract_strided_slice %297 {offsets = [8, 0], sizes = [8, 32], strides = [1, 1]} : vector<16x32xf32> to vector<8x32xf32>
    %cst_160 = arith.constant dense<0.000000e+00> : vector<32xf32>
    %304 = vector.multi_reduction <add>, %303, %cst_160 [0] : vector<8x32xf32> to vector<32xf32>
    %305 = vector.shape_cast %304 : vector<32xf32> to vector<1x32xf32>
    %cst_161 = arith.constant 8.000000e+00 : f32
    %306 = vector.broadcast %cst_161 : f32 to vector<1x32xf32>
    %307 = arith.divf %305, %306 : vector<1x32xf32>
    %308 = tpu.concatenate %302, %307 in 0 : vector<1x32xf32>, vector<1x32xf32> -> vector<2x32xf32>
    %c0_162 = arith.constant 0 : index
    %c0_163 = arith.constant 0 : index
    %309 = vector.load %arg21[%c0_162, %c0_163] : memref<2x32xf32, #tpu.memory_space<vmem>>, vector<2x32xf32>
    tpu.vector_store %arg21[%c0_162, %c0_163], %308 {strides = array<i32>} : memref<2x32xf32, #tpu.memory_space<vmem>>, vector<2x32xf32>,
    return
  }
}

</mosaic_0001>

<bundles_post_ra>
// kernel: transformer_encoder_forward.1
= control target key start
LH: loop header
LB: loop body
LE: loop exit
PB: predicated region body
PF: predicated region fallthrough
CT: control target
= control target key end

     0   :  { %s3670_s0 = inlined_call_operand.vmem [shape: s32[16,1], index: 0, kind: input, shape index: {}]   ;;  %s3671_s1 = inlined_call_operand.vmem [shape: f32[56,32], index: 1, kind: input, shape index: {}]   ;;  %s3672_s2 = inlined_call_operand.vmem [shape: f32[16,32], index: 2, kind: input, shape index: {}]   ;;  %s3673_s3 = inlined_call_operand.vmem [shape: f32[32,4], index: 3, kind: input, shape index: {}]   ;;  %s3674_s4 = inlined_call_operand.vmem [shape: f32[4,32], index: 4, kind: input, shape index: {}]   ;;  %s3675_s5 = inlined_call_operand.vmem [shape: bf16[2,32,32], index: 5, kind: input, shape index: {}]   ;;  %s3676_s6 = inlined_call_operand.vmem [shape: bf16[2,32,32], index: 6, kind: input, shape index: {}]   ;;  %s3677_s7 = inlined_call_operand.vmem [shape: bf16[2,32,32], index: 7, kind: input, shape index: {}]   ;;  %s3678_s8 = inlined_call_operand.vmem [shape: f32[2,1,32], index: 8, kind: input, shape index: {}]   ;;  %s3679_s9 = inlined_call_operand.vmem [shape: f32[2,1,32], index: 9, kind: input, shape index: {}]   ;;  %s3680_s10 = inlined_call_operand.vmem [shape: f32[2,1,32], index: 10, kind: input, shape index: {}]   ;;  %s3681_s11 = inlined_call_operand.vmem [shape: bf16[2,32,32], index: 11, kind: input, shape index: {}]   ;;  %s3682_s12 = inlined_call_operand.vmem [shape: f32[2,1,32], index: 12, kind: input, shape index: {}]   ;;  %s3683_s13 = inlined_call_operand.vmem [shape: f32[2,1,32], index: 13, kind: input, shape index: {}]   ;;  %s3684_s14 = inlined_call_operand.vmem [shape: f32[2,1,32], index: 14, kind: input, shape index: {}]   ;;  %s3685_s15 = inlined_call_operand.vmem [shape: bf16[2,32,64], index: 15, kind: input, shape index: {}]   ;;  %s3686_s16 = inlined_call_operand.vmem [shape: f32[2,1,64], index: 16, kind: input, shape index: {}]   ;;  %s3687_s17 = inlined_call_operand.vmem [shape: bf16[2,64,32], index: 17, kind: input, shape index: {}]   ;;  %s3688_s18 = inlined_call_operand.vmem [shape: f32[2,1,32], index: 18, kind: input, shape index: {}]   ;;  %s3689_s19 = inlined_call_operand.vmem [shape: f32[2,1,32], index: 19, kind: input, shape index: {}]   ;;  %s3690_s20 = inlined_call_operand.vmem [shape: f32[2,1,32], index: 20, kind: input, shape index: {}]   ;;  %s3691_s21 = inlined_call_operand.hbm [shape: f32[2,32], index: 21, kind: output, shape index: {}]  }
   0x1   :  { %3698 = sst [smem:[#allocation5_spill]] %s3670_s0 }
   0x2   :  { %3699 = sst [smem:[#allocation6_spill]] %s3671_s1 }
   0x3   :  { %3700 = sst [smem:[#allocation7_spill]] %s3672_s2 }
   0x4   :  { %3701 = sst [smem:[#allocation8_spill]] %s3673_s3 }
   0x5   :  { %3702 = sst [smem:[#allocation9_spill]] %s3674_s4 }
   0x6   :  { %3703 = sst [smem:[#allocation10_spill]] %s3675_s5 }
   0x7   :  { %3704 = sst [smem:[#allocation11_spill]] %s3686_s16 }
   0x8   :  { %s3705_s26 = sld [smem:[#allocation5_spill]]  ;;  %s3706_s16 = sld [smem:[#allocation6_spill]]  ;;  %v3135_v2 = vmov 0   ;;  %v3136_v11 = vmov 0.0  }
   0x9   :  { %3042 = vset.pattern.permute.xlu0 %v3135_v2  ;;  %2745 = vmatprep.subr.bf16.mxu1 %v3136_v11  ;;  %s3707_s3 = sld [smem:[#allocation10_spill]] }
   0xe   :  { %v70_v0 = vld [vmem:[%s3705_s26] sm:$0xff]  ;;  %v87_v3 = vld [vmem:[%s3706_s16 + $0x8] sm:$0xff]  ;;  %v88_v4 = vld [vmem:[%s3706_s16 + $0x10] sm:$0xff] }
   0xf   :  { %v86_v1 = vld [vmem:[%s3706_s16] sm:$0xff]  ;;  %v89_v5 = vld [vmem:[%s3706_s16 + $0x18] sm:$0xff]  ;;  %75 = vperm.xlu0 %3042, %v70_v0   ;;  %v71_v6 = vld [vmem:[%s3705_s26 + $0x8] sm:$0xff] }
  0x10   :  { %v2977_v7 = vpack.c.bf16 %v87_v3, %v86_v1  ;;  %v2981_v8 = vpack.c.bf16 %v89_v5, %v88_v4  ;;  %v90_v9 = vld [vmem:[%s3706_s16 + $0x20] sm:$0xff]  ;;  %v91_v10 = vld [vmem:[%s3706_s16 + $0x28] sm:$0xff]  ;;  %v92_v14 = vld [vmem:[%s3706_s16 + $0x30] sm:$0xff] }
  0x11   :  { %v2985_v12 = vpack.c.bf16 %v91_v10, %v90_v9  ;;  %v3043_v13 = vld [vmem:[%s3707_s3] sm:$0xff]  }
  0x12   :  { %2978 = vmatprep.subr.bf16.mxu0 %v2977_v7  ;;  %2746 = vmatpush3.bf16.msra.mxu1 %v3043_v13 }
  0x13   :  { %2980 = vmatpush3.bf16.msra.mxu0 %v2977_v7  ;;  %78 = vperm.xlu0 %3042, %v71_v6  }
  0x14   :  { %2982 = vmatprep.subr.bf16.mxu0 %v2981_v8  ;;  %2747 = vmatprep.subr.bf16.mxu1 %v3136_v11 }
  0x17   :  { %2984 = vmatpush3.bf16.msra.mxu0 %v2981_v8 }
  0x18   :  { %2986 = vmatprep.subr.bf16.mxu0 %v2985_v12 }
  0x1b   :  { %2988 = vmatpush3.bf16.msra.mxu0 %v2985_v12 }
  0x1c   :  { %2740 = vmatprep.subr.mxu0 %v92_v14 }
  0x1f   :  { %2741 = vmatpush3.msra.mxu0 %v92_v14 }
  0x20   :  { %26 = vsyncpa [#allocation3], 0  ;;  %v72_v15 = vlaneseq  ;;  %vm95_vm0 = vcmask 457728   ;;  %v3044_v21 = vld [vmem:[%s3707_s3 + $0x8] sm:$0xff]   ;;  %vm3137_vm3 = vmmov 0   ;;  %s3708_s5 = sld [smem:[#allocation7_spill]] }
  0x21   :  { %2748 = vmatpush3.bf16.msra.mxu1 %v3044_v21  ;;  %2749 = vmatprep.mubr.msk.bf16.mxu1 %vm3137_vm3, %v3136_v11  ;;  %vm206_vm4 = vcmask 261120   ;;  %v3045_v28 = vld [vmem:[%s3676_s6] sm:$0xff]   ;;  %v3046_v30 = vld [vmem:[%s3676_s6 + $0x8] sm:$0xff]   ;;  %s3709_s4 = sld [smem:[#allocation8_spill]]  ;;  %v3138_v35 = vmov 0.0|0.0   ;;  %s3710_s16 = sld [smem:[#allocation9_spill]] }
  0x22   :  { %v73_v16 = vand.u32 127, %v72_v15  ;;  %2753 = vmatprep.subr.bf16.mxu1 %v3136_v11  ;;  %v3047_v31 = vld [vmem:[%s3677_s7] sm:$0xff]   ;;  %v3048_v32 = vld [vmem:[%s3677_s7 + $0x8] sm:$0xff]   ;;  %2995 = vmatprep.subr.bf16.mxu0 %v3138_v35  ;;  %vm542_vm5 = vcmask 1043456   ;;  %vm538_vm6 = vcmask 31744   ;;  %s3711_s26 = sld [smem:[#allocation11_spill]] }
  0x23   :  { %v2501_v44 = vld [vmem:[%s3678_s8] ss:$0 sm:$0xff]  ;;  %vm1227_vm7 = vcmask 523264   ;;  %vm2479_vm8 = vcmask 1040384   ;;  %vm2481_vm9 = vcmask 254976  }
  0x24   :  { %v2505_v45 = vld [vmem:[%s3679_s9] ss:$0 sm:$0xff] }
  0x26   :  { %v94_v22 = vld [vmem:[%s3708_s5 + $0x8] sm:$0xff]  ;;  %v93_v23 = vld [vmem:[%s3708_s5] sm:$0xff] }
  0x27   :  { %v177_v33 = vld [vmem:[%s3709_s4] sm:$0xff]  ;;  %v178_v34 = vld [vmem:[%s3709_s4 + $0x8] sm:$0xff]  ;;  %v179_v37 = vld [vmem:[%s3709_s4 + $0x10] sm:$0xff] }
  0x28   :  { %v3335_v36 = vpack.c.bf16 %v178_v34, %v177_v33  ;;  %v180_v38 = vld [vmem:[%s3709_s4 + $0x18] sm:$0xff]  ;;  %v3376_v62 = vld [vmem:[%s3710_s16] sm:$0xf] }
  0x29   :  { %v3348_v39 = vpack.c.bf16 %v180_v38, %v179_v37 }
  0x8e   :  { %v76_v17 = vpop.permute.xlu0 %75 }
  0x8f   :  { %vm80_vm1 = vcmp.eq.s32.totalorder %v73_v16, %v76_v17  ;;  %v2509_v17 = vld [vmem:[%s3680_s10] ss:$0 sm:$0xff] }
  0x90   :  { %v2497_v18 = vsel %vm80_vm1, 1.0, %v3136_v11 }
  0x91   :  { %2742 = vmatprep.mubr.msk.f32.mxu0 %vm95_vm0, %v2497_v18 }
  0x92   :  { %v79_v19 = vpop.permute.xlu0 %78 }
  0x93   :  { %vm81_vm2 = vcmp.eq.s32.totalorder %v73_v16, %v79_v19 }
  0x94   :  { %v2498_v20 = vsel %vm81_vm2, 1.0, %v3136_v11 }
  0x95   :  { %2743 = vmatmul.mubr.msk.f32.vlgmr.msra.gmra.mrb[0].mxu0 %vm95_vm0, %v2498_v20 }
  0x96   :  { %2788 = vmatprep.mubr.msk.f32.mxu0 %vm3137_vm3, %v3136_v11  ;;  %2997 = vmatpush3.bf16.msra.mxu0 %v3335_v36 }
  0x97   :  { %2998 = vmatprep.subr.bf16.mxu0 %v3138_v35 }
  0x9a   :  { %3000 = vmatpush3.bf16.msra.mxu0 %v3348_v39 }
  0x9b   :  { %3001 = vmatprep.subr.bf16.mxu0 %v3138_v35 }
 0x168   :  { %v2744_v24 = vpop.f32.mrb[0].mxu0 }
 0x169   :  { %v3298_v25 = vadd.f32 %v2744_v24, %v94_v22  ;;  %v168_v26 = vpop.f32.mrb[1].mxu0 }
 0x16a   :  { %v3300_v27 = vadd.f32 %v168_v26, %v93_v23 }
 0x16c   :  { %v182_v29 = vpack.c.bf16 %v3298_v25, %v3300_v27 }
 0x16e   :  { %2750 = vmatmul.mubr.msk.bf16.vlgmr.msra.gmra.mrb[0].mxu1 %vm206_vm4, %v182_v29 }
 0x16f   :  { %2754 = vmatpush3.bf16.msra.mxu1 %v3045_v28  ;;  %2757 = vmatprep.mubr.msk.bf16.mxu1 %vm3137_vm3, %v3136_v11 }
 0x170   :  { %2755 = vmatprep.subr.bf16.mxu1 %v3136_v11 }
 0x173   :  { %2756 = vmatpush3.bf16.msra.mxu1 %v3046_v30 }
 0x174   :  { %2761 = vmatprep.subr.bf16.mxu1 %v3136_v11 }
 0x176   :  { %2758 = vmatmul.mubr.msk.bf16.vlgmr.msra.gmra.mrb[4].mxu1 %vm206_vm4, %v182_v29 }
 0x177   :  { %2762 = vmatpush3.bf16.msra.mxu1 %v3047_v31  ;;  %2765 = vmatprep.mubr.msk.bf16.mxu1 %vm3137_vm3, %v3136_v11 }
 0x178   :  { %2763 = vmatprep.subr.bf16.mxu1 %v3136_v11 }
 0x17b   :  { %2764 = vmatpush3.bf16.msra.mxu1 %v3048_v32 }
 0x17c   :  { %2989 = vmatprep.subr.bf16.mxu1 %v3138_v35 }
 0x17e   :  { %2766 = vmatmul.mubr.msk.bf16.vlgmr.msra.gmra.mrb[8].mxu1 %vm206_vm4, %v182_v29 }
 0x17f   :  { %2777 = vmatprep.mubr.msk.f32.mxu1 %vm3137_vm3, %v3136_v11  ;;  %2991 = vmatpush3.bf16.msra.mxu1 %v3335_v36 }
 0x180   :  { %2992 = vmatprep.subr.bf16.mxu1 %v3138_v35 }
 0x183   :  { %2994 = vmatpush3.bf16.msra.mxu1 %v3348_v39 }
 0x184   :  { %2791 = vmatprep.subr.mxu1 %v3136_v11 }
 0x241   :  { %v244_v40 = vpop.f32.mrb[0].mxu1 }
 0x242   :  { %v2751_v41 = vpop.f32.mrb[1].mxu1  ;;  %v245_v47 = vadd.f32 %v2501_v44, %v244_v40 }
 0x243   :  { %v247_v42 = vpop.f32.mrb[2].mxu1 }
 0x244   :  { %v2752_v43 = vpop.f32.mrb[3].mxu1  ;;  %v248_v48 = vadd.f32 %v2501_v44, %v247_v42 }
 0x249   :  { %v308_v46 = vpop.f32.mrb[4].mxu1 }
 0x24a   :  { %v309_v49 = vadd.f32 %v2505_v45, %v308_v46  ;;  %v2759_v50 = vpop.f32.mrb[5].mxu1  ;;  %v3050_v46 = vld [vmem:[%s3681_s11 + $0x8] sm:$0xff]  }
 0x24b   :  { %v311_v51 = vpop.f32.mrb[6].mxu1 }
 0x24c   :  { %v379_v52 = vmul.f32 %v309_v49, %v245_v47  ;;  %v693_v53 = vmul.f32 %v309_v49, %v248_v48  ;;  %v312_v54 = vadd.f32 %v2505_v45, %v311_v51  ;;  %v2760_v55 = vpop.f32.mrb[7].mxu1  ;;  %v3049_v45 = vld [vmem:[%s3681_s11] sm:$0xff]  }
 0x24d   :  { %v2525_v55 = vld [vmem:[%s3682_s12] ss:$0 sm:$0xff] }
 0x24e   :  { %v453_v56 = vmul.f32 %v312_v54, %v245_v47  ;;  %v767_v57 = vmul.f32 %v312_v54, %v248_v48  ;;  %2778 = vmatmul.mubr.msk.f32.vlgmr.msra.gmra.mrb[12].mxu1 %vm206_vm4, %v379_v52 }
 0x24f   :  { %2793 = vmatprep.mubr.msk.f32.mxu1 %vm3137_vm3, %v3136_v11  ;;  %2792 = vmatpush3.msk.msra.mxu1 %vm542_vm5, %v3376_v62 }
 0x250   :  { %2789 = vmatmul.mubr.msk.f32.vlgmr.msra.gmra.mrb[2].mxu0 %vm206_vm4, %v453_v56  ;;  %2796 = vmatprep.subr.mxu1 %v3136_v11 }
 0x251   :  { %3003 = vmatpush3.bf16.msra.mxu0 %v3335_v36  ;;  %v372_v58 = vpop.f32.mrb[8].mxu1  ;;  %2809 = vmatprep.mubr.msk.f32.mxu0 %vm3137_vm3, %v3136_v11 }
 0x252   :  { %v2767_v59 = vpop.f32.mrb[9].mxu1  ;;  %3004 = vmatprep.subr.bf16.mxu0 %v3138_v35  ;;  %v373_v18 = vadd.f32 %v2509_v17, %v372_v58 }
 0x253   :  { %v375_v60 = vpop.f32.mrb[10].mxu1 }
 0x254   :  { %v2768_v61 = vpop.f32.mrb[11].mxu1  ;;  %v376_v22 = vadd.f32 %v2509_v17, %v375_v60 }
 0x255   :  { %3006 = vmatpush3.bf16.msra.mxu0 %v3348_v39 }
 0x256   :  { %2823 = vmatprep.subr.mxu0 %v3136_v11 }
 0x258   :  { %2810 = vmatmul.mubr.msk.f32.vlgmr.msra.gmra.mrb[4].mxu0 %vm206_vm4, %v693_v53 }
 0x259   :  { %2825 = vmatprep.mubr.msk.f32.mxu0 %vm3137_vm3, %v3136_v11  ;;  %2824 = vmatpush3.msk.msra.mxu0 %vm542_vm5, %v3376_v62 }
 0x25a   :  { %2833 = vmatprep.subr.bf16.mxu0 %v3136_v11 }
 0x321   :  { %v449_v63 = vpop.f32.mrb[12].mxu1 }
 0x322   :  { %v2779_v0 = vpop.f32.mrb[13].mxu1 }
 0x323   :  { %v523_v1 = vpop.f32.mrb[2].mxu0 }
 0x324   :  { %v527_v2 = vmax.f32 %v449_v63, %v523_v1  ;;  %v2790_v3 = vpop.f32.mrb[3].mxu0 }
 0x326   :  { %v528_v4 = vsub.f32 %v449_v63, %v527_v2  ;;  %v531_v5 = vsub.f32 %v523_v1, %v527_v2 }
 0x328   :  { %v529_v6 = vmul.f32 1.442695, %v528_v4  ;;  %v532_v7 = vmul.f32 1.442695, %v531_v5 }
 0x32a   :  { %3071 = vpow2.f32 %v529_v6 }
 0x32b   :  { %3073 = vpow2.f32 %v532_v7  ;;  %v763_v8 = vpop.f32.mrb[4].mxu0 }
 0x32c   :  { %v2811_v9 = vpop.f32.mrb[5].mxu0 }
 0x334   :  { %v3072_v10 = vpop.eup %3071 }
 0x335   :  { %v3074_v12 = vpop.eup %3073 }
 0x336   :  { %v534_v13 = vadd.f32 %v3074_v12, %v3072_v10 }
 0x338   :  { %3075 = vrcp.f32 %v534_v13  ;;  %v3052_v13 = vld [vmem:[%s3685_s15 + $0x8] sm:$0xff]  }
 0x342   :  { %v3076_v14 = vpop.eup %3075 }
 0x343   :  { %v537_v15 = vmul.f32 %v3076_v14, %v3072_v10  ;;  %v617_v16 = vmul.f32 %v3076_v14, %v3074_v12  ;;  %v3053_v14 = vld [vmem:[%s3687_s17] sm:$0xff]  }
 0x345   :  { %2794 = vmatmul.mubr.msk.f32.vlgmr.msra.gmra.mrb[14].mxu1 %vm538_vm6, %v537_v15  ;;  %v3054_v15 = vld [vmem:[%s3687_s17 + $0x8] sm:$0xff]  }
 0x346   :  { %2797 = vmatpush3.msk.msra.mxu1 %vm542_vm5, %v3376_v62  ;;  %2798 = vmatprep.mubr.msk.f32.mxu1 %vm3137_vm3, %v3136_v11 }
 0x347   :  { %3007 = vmatprep.subr.bf16.mxu1 %v3138_v35 }
 0x349   :  { %2799 = vmatmul.mubr.msk.f32.vlgmr.msra.gmra.mrb[16].mxu1 %vm538_vm6, %v617_v16 }
 0x34a   :  { %3009 = vmatpush3.bf16.msra.mxu1 %v3335_v36  ;;  %2820 = vmatprep.mubr.msk.f32.mxu1 %vm3137_vm3, %v3136_v11 }
 0x34b   :  { %3010 = vmatprep.subr.bf16.mxu1 %v3138_v35 }
 0x34e   :  { %3012 = vmatpush3.bf16.msra.mxu1 %v3348_v39 }
 0x34f   :  { %2828 = vmatprep.subr.mxu1 %v3136_v11 }
 0x351   :  { %2821 = vmatmul.mubr.msk.f32.vlgmr.msra.gmra.mrb[18].mxu1 %vm206_vm4, %v767_v57 }
 0x352   :  { %2829 = vmatpush3.msk.msra.mxu1 %vm542_vm5, %v3376_v62  ;;  %2830 = vmatprep.mubr.msk.f32.mxu1 %vm3137_vm3, %v3136_v11 }
 0x353   :  { %2841 = vmatprep.subr.bf16.mxu1 %v3136_v11 }
 0x418   :  { %v612_v19 = vpop.f32.mrb[14].mxu1 }
 0x419   :  { %v616_v20 = vmul.f32 %v612_v19, %v373_v18  ;;  %v2795_v21 = vpop.f32.mrb[15].mxu1 }
 0x41c   :  { %v687_v23 = vpop.f32.mrb[16].mxu1 }
 0x41d   :  { %v691_v24 = vmul.f32 %v687_v23, %v376_v22  ;;  %v2800_v26 = vpop.f32.mrb[17].mxu1 }
 0x41f   :  { %v692_v28 = vadd.f32 %v691_v24, %v616_v20  ;;  %v2529_v24 = vld [vmem:[%s3683_s13] ss:$0 sm:$0xff] }
 0x424   :  { %v837_v29 = vpop.f32.mrb[18].mxu1 }
 0x425   :  { %v841_v30 = vmax.f32 %v763_v8, %v837_v29  ;;  %v2822_v31 = vpop.f32.mrb[19].mxu1 }
 0x427   :  { %v842_v32 = vsub.f32 %v763_v8, %v841_v30  ;;  %v845_v33 = vsub.f32 %v837_v29, %v841_v30  ;;  %v2530_v30 = vld [vmem:[%s3684_s14] ss:$0 sm:$0xff] }
 0x429   :  { %v843_v34 = vmul.f32 1.442695, %v842_v32  ;;  %v846_v37 = vmul.f32 1.442695, %v845_v33 }
 0x42b   :  { %3077 = vpow2.f32 %v843_v34 }
 0x42c   :  { %3079 = vpow2.f32 %v846_v37  ;;  %v3055_v37 = vld [vmem:[%s3687_s17 + $0x10] sm:$0xff]  }
 0x435   :  { %v3078_v38 = vpop.eup %3077 }
 0x436   :  { %v3080_v40 = vpop.eup %3079 }
 0x437   :  { %v848_v41 = vadd.f32 %v3080_v40, %v3078_v38 }
 0x439   :  { %3081 = vrcp.f32 %v848_v41 }
 0x443   :  { %v3082_v42 = vpop.eup %3081 }
 0x444   :  { %v851_v43 = vmul.f32 %v3082_v42, %v3078_v38  ;;  %v926_v44 = vmul.f32 %v3082_v42, %v3080_v40  ;;  %v3056_v38 = vld [vmem:[%s3687_s17 + $0x18] sm:$0xff]   ;;  %v2531_v40 = vld [vmem:[%s3711_s26] ss:$0 sm:$0xff] }
 0x446   :  { %2826 = vmatmul.mubr.msk.f32.vlgmr.msra.gmra.mrb[6].mxu0 %vm538_vm6, %v851_v43  ;;  %2831 = vmatmul.mubr.msk.f32.vlgmr.msra.gmra.mrb[20].mxu1 %vm538_vm6, %v926_v44 }
 0x447   :  { %2837 = vmatprep.mubr.msk.bf16.mxu0 %vm3137_vm3, %v3136_v11  ;;  %2845 = vmatprep.mubr.msk.bf16.mxu1 %vm3137_vm3, %v3136_v11 }
 0x448   :  { %2834 = vmatpush3.bf16.msra.mxu0 %v3049_v45 }
 0x449   :  { %2835 = vmatprep.subr.bf16.mxu0 %v3136_v11 }
 0x44c   :  { %2836 = vmatpush3.bf16.msra.mxu0 %v3050_v46 }
 0x44d   :  { %2849 = vmatprep.subr.bf16.mxu0 %v3136_v11 }
 0x519   :  { %v921_v47 = vpop.f32.mrb[6].mxu0  ;;  %v996_v48 = vpop.f32.mrb[20].mxu1 }
 0x51a   :  { %v925_v49 = vmul.f32 %v921_v47, %v373_v18  ;;  %v1000_v50 = vmul.f32 %v996_v48, %v376_v22  ;;  %v2827_v51 = vpop.f32.mrb[7].mxu0  ;;  %v2832_v52 = vpop.f32.mrb[21].mxu1 }
 0x51c   :  { %v1001_v53 = vadd.f32 %v1000_v50, %v925_v49  ;;  %v2535_v50 = vld [vmem:[%s3688_s18] ss:$0 sm:$0xff] }
 0x51e   :  { %v1002_v54 = vpack.c.bf16 %v1001_v53, %v692_v28 }
 0x520   :  { %2838 = vmatmul.mubr.msk.bf16.vlgmr.msra.gmra.mrb[8].mxu0 %vm206_vm4, %v1002_v54 }
 0x521   :  { %2857 = vmatprep.mubr.msk.bf16.mxu0 %vm3137_vm3, %v3136_v11  ;;  %2850 = vmatpush3.bf16.msra.mxu0 %v3053_v14 }
 0x522   :  { %2851 = vmatprep.subr.bf16.mxu0 %v3136_v11 }
 0x525   :  { %2852 = vmatpush3.bf16.msra.mxu0 %v3054_v15 }
 0x526   :  { %2853 = vmatprep.subr.bf16.mxu0 %v3136_v11 }
 0x529   :  { %2854 = vmatpush3.bf16.msra.mxu0 %v3055_v37 }
 0x52a   :  { %2855 = vmatprep.subr.bf16.mxu0 %v3136_v11 }
 0x52d   :  { %2856 = vmatpush3.bf16.msra.mxu0 %v3056_v38 }
 0x52e   :  { %2877 = vmatprep.subr.bf16.mxu0 %v3136_v11 }
 0x5f3   :  { %v1063_v56 = vpop.f32.mrb[8].mxu0 }
 0x5f4   :  { %v1064_v57 = vadd.f32 %v2525_v55, %v1063_v56  ;;  %v2839_v58 = vpop.f32.mrb[9].mxu0 }
 0x5f5   :  { %v1066_v59 = vpop.f32.mrb[10].mxu0 }
 0x5f6   :  { %v1067_v60 = vadd.f32 %v2525_v55, %v1066_v59  ;;  %v2840_v61 = vpop.f32.mrb[11].mxu0  ;;  %v1070_v63 = vadd.f32 %v1064_v57, %v3300_v27 }
 0x5f8   :  { %v1074_v0 = vsel %vm206_vm4, %v1070_v63, 0.0  ;;  %v1071_v1 = vadd.f32 %v1067_v60, %v3298_v25  ;;  %v3051_v25 = vld [vmem:[%s3685_s15] sm:$0xff]  }
 0x5f9   :  { %1075 = vadd.xlane.f32.xlu1 %v1074_v0  ;;  %2842 = vmatpush3.bf16.msra.mxu1 %v3051_v25 }
 0x5fa   :  { %v1077_v2 = vsel %vm206_vm4, %v1071_v1, 0.0  ;;  %2843 = vmatprep.subr.bf16.mxu1 %v3136_v11 }
 0x5fd   :  { %1078 = vadd.xlane.f32.xlu1 %v1077_v2  ;;  %2844 = vmatpush3.bf16.msra.mxu1 %v3052_v13 }
 0x5fe   :  { %2861 = vmatprep.subr.bf16.mxu1 %v3136_v11 }
 0x686   :  { %v1076_v3 = vpop.xlane.xlu1 %1075 }
 0x687   :  { %v1081_v4 = vmul.f32 0.03125, %v1076_v3 }
 0x689   :  { %v1083_v5 = vsub.f32 %v1070_v63, %v1081_v4 }
 0x68a   :  { %v1079_v6 = vpop.xlane.xlu1 %1078 }
 0x68b   :  { %v1082_v7 = vmul.f32 0.03125, %v1079_v6  ;;  %v1085_v8 = vmul.f32 %v1083_v5, %v1083_v5 }
 0x68d   :  { %v1084_v9 = vsub.f32 %v1071_v1, %v1082_v7  ;;  %v1087_v10 = vsel %vm206_vm4, %v1085_v8, 0.0  ;;  %v3057_v8 = vld [vmem:[%s3707_s3 + $0x10] sm:$0xff]  }
 0x68e   :  { %1088 = vadd.xlane.f32.xlu0 %v1087_v10  ;;  %v3059_v10 = vld [vmem:[%s3707_s3 + $0x18] sm:$0xff]  }
 0x68f   :  { %v1086_v12 = vmul.f32 %v1084_v9, %v1084_v9 }
 0x691   :  { %v1090_v27 = vsel %vm206_vm4, %v1086_v12, 0.0  ;;  %v3060_v12 = vld [vmem:[%s3677_s7 + $0x18] sm:$0xff]  }
 0x692   :  { %1091 = vadd.xlane.f32.xlu1 %v1090_v27 }
 0x71b   :  { %v1089_v16 = vpop.xlane.xlu0 %1088 }
 0x71c   :  { %v1093_v17 = vmul.f32 0.03125, %v1089_v16 }
 0x71e   :  { %v1095_v18 = vadd.f32 1e-05, %v1093_v17 }
 0x71f   :  { %v1092_v19 = vpop.xlane.xlu1 %1091 }
 0x720   :  { %3083 = vrsqrt.f32 %v1095_v18  ;;  %v1094_v20 = vmul.f32 0.03125, %v1092_v19  ;;  %v2541_v19 = vld [vmem:[%s3689_s19] ss:$0 sm:$0xff] }
 0x722   :  { %v1096_v21 = vadd.f32 1e-05, %v1094_v20 }
 0x724   :  { %3085 = vrsqrt.f32 %v1096_v21 }
 0x72a   :  { %v3084_v22 = vpop.eup %3083 }
 0x72b   :  { %v1099_v23 = vmul.f32 %v3084_v22, %v1083_v5 }
 0x72d   :  { %v1107_v28 = vmul.f32 %v2529_v24, %v1099_v23  ;;  %v2542_v23 = vld [vmem:[%s3690_s20] ss:$0 sm:$0xff] }
 0x72e   :  { %v3086_v26 = vpop.eup %3085 }
 0x72f   :  { %v1100_v29 = vmul.f32 %v3086_v26, %v1084_v9  ;;  %v1115_v32 = vadd.f32 %v2530_v30, %v1107_v28  ;;  %v3058_v9 = vld [vmem:[%s3677_s7 + $0x10] sm:$0xff]  }
 0x731   :  { %v1108_v31 = vmul.f32 %v2529_v24, %v1100_v29  ;;  %v3061_v29 = vld [vmem:[%s3676_s6 + $0x10] sm:$0xff]  }
 0x733   :  { %v1116_v33 = vadd.f32 %v2530_v30, %v1108_v31  ;;  %v3062_v31 = vld [vmem:[%s3676_s6 + $0x18] sm:$0xff]  }
 0x735   :  { %v1117_v34 = vpack.c.bf16 %v1116_v33, %v1115_v32 }
 0x737   :  { %2846 = vmatmul.mubr.msk.bf16.vlgmr.msra.gmra.mrb[24].mxu1 %vm206_vm4, %v1117_v34 }
 0x738   :  { %2865 = vmatprep.mubr.msk.bf16.mxu1 %vm3137_vm3, %v3136_v11  ;;  %2862 = vmatpush3.bf16.msra.mxu1 %v3057_v8 }
 0x739   :  { %2863 = vmatprep.subr.bf16.mxu1 %v3136_v11 }
 0x73c   :  { %2864 = vmatpush3.bf16.msra.mxu1 %v3059_v10 }
 0x73d   :  { %2869 = vmatprep.subr.bf16.mxu1 %v3136_v11 }
 0x80a   :  { %v1178_v41 = vpop.f32.mrb[24].mxu1 }
 0x80b   :  { %v1179_v42 = vadd.f32 %v2531_v40, %v1178_v41  ;;  %v2847_v43 = vpop.f32.mrb[25].mxu1 }
 0x80c   :  { %v1181_v44 = vpop.f32.mrb[26].mxu1  ;;  %v2548_v43 = vld [vmem:[%s3678_s8 + $0x1] ss:$0 sm:$0xff] }
 0x80d   :  { %v1182_v45 = vadd.f32 %v2531_v40, %v1181_v44  ;;  %v2848_v46 = vpop.f32.mrb[27].mxu1  ;;  %v1185_v47 = vmax.f32 %v1179_v42, 0.0  ;;  %v2557_v44 = vld [vmem:[%s3679_s9 + $0x1] ss:$0 sm:$0xff] }
 0x80f   :  { %v1186_v48 = vmax.f32 %v1182_v45, 0.0 }
 0x811   :  { %v1187_v49 = vpack.c.bf16 %v1186_v48, %v1185_v47 }
 0x813   :  { %2858 = vmatmul.mubr.msk.bf16.vlgmr.msra.gmra.mrb[12].mxu0 %vm1227_vm7, %v1187_v49 }
 0x814   :  { %2881 = vmatprep.mubr.msk.bf16.mxu0 %vm3137_vm3, %v3136_v11  ;;  %2878 = vmatpush3.bf16.msra.mxu0 %v3058_v9 }
 0x815   :  { %2879 = vmatprep.subr.bf16.mxu0 %v3136_v11 }
 0x818   :  { %2880 = vmatpush3.bf16.msra.mxu0 %v3060_v12 }
 0x819   :  { %3019 = vmatprep.subr.bf16.mxu0 %v3138_v35 }
 0x8e6   :  { %v1265_v51 = vpop.f32.mrb[12].mxu0 }
 0x8e7   :  { %v1266_v52 = vadd.f32 %v2535_v50, %v1265_v51  ;;  %v2859_v53 = vpop.f32.mrb[13].mxu0 }
 0x8e8   :  { %v1268_v54 = vpop.f32.mrb[14].mxu0 }
 0x8e9   :  { %v1269_v55 = vadd.f32 %v2535_v50, %v1268_v54  ;;  %v2860_v56 = vpop.f32.mrb[15].mxu0  ;;  %v1272_v57 = vadd.f32 %v1266_v52, %v1115_v32 }
 0x8eb   :  { %v1276_v58 = vsel %vm206_vm4, %v1272_v57, 0.0  ;;  %v1273_v59 = vadd.f32 %v1269_v55, %v1116_v33 }
 0x8ec   :  { %1277 = vadd.xlane.f32.xlu1 %v1276_v58 }
 0x8ed   :  { %v1279_v60 = vsel %vm206_vm4, %v1273_v59, 0.0 }
 0x8f0   :  { %1280 = vadd.xlane.f32.xlu1 %v1279_v60 }
 0x979   :  { %v1278_v61 = vpop.xlane.xlu1 %1277 }
 0x97a   :  { %v1282_v63 = vmul.f32 0.03125, %v1278_v61 }
 0x97c   :  { %v1284_v0 = vsub.f32 %v1272_v57, %v1282_v63 }
 0x97d   :  { %v1281_v1 = vpop.xlane.xlu1 %1280 }
 0x97e   :  { %v1283_v2 = vmul.f32 0.03125, %v1281_v1  ;;  %v1286_v3 = vmul.f32 %v1284_v0, %v1284_v0 }
 0x980   :  { %v1285_v4 = vsub.f32 %v1273_v59, %v1283_v2  ;;  %v1288_v5 = vsel %vm206_vm4, %v1286_v3, 0.0 }
 0x981   :  { %1289 = vadd.xlane.f32.xlu1 %v1288_v5 }
 0x982   :  { %v1287_v6 = vmul.f32 %v1285_v4, %v1285_v4 }
 0x984   :  { %v1291_v7 = vsel %vm206_vm4, %v1287_v6, 0.0 }
 0x985   :  { %1292 = vadd.xlane.f32.xlu1 %v1291_v7 }
 0xa0e   :  { %v1290_v27 = vpop.xlane.xlu1 %1289 }
 0xa0f   :  { %v1294_v25 = vmul.f32 0.03125, %v1290_v27 }
 0xa11   :  { %v1296_v13 = vadd.f32 1e-05, %v1294_v25 }
 0xa12   :  { %v1293_v14 = vpop.xlane.xlu1 %1292 }
 0xa13   :  { %3087 = vrsqrt.f32 %v1296_v13  ;;  %v1295_v15 = vmul.f32 0.03125, %v1293_v14 }
 0xa15   :  { %v1297_v16 = vadd.f32 1e-05, %v1295_v15 }
 0xa17   :  { %3089 = vrsqrt.f32 %v1297_v16 }
 0xa1d   :  { %v3088_v17 = vpop.eup %3087 }
 0xa1e   :  { %v1300_v18 = vmul.f32 %v3088_v17, %v1284_v0 }
 0xa20   :  { %v1308_v21 = vmul.f32 %v2541_v19, %v1300_v18 }
 0xa21   :  { %v3090_v20 = vpop.eup %3089 }
 0xa22   :  { %v1301_v22 = vmul.f32 %v3090_v20, %v1285_v4  ;;  %v3500_v26 = vadd.f32 %v2542_v23, %v1308_v21 }
 0xa24   :  { %v1309_v24 = vmul.f32 %v2541_v19, %v1301_v22 }
 0xa26   :  { %v3502_v28 = vadd.f32 %v2542_v23, %v1309_v24 }
 0xa28   :  { %v1318_v30 = vpack.c.bf16 %v3502_v28, %v3500_v26 }
 0xa2a   :  { %2866 = vmatmul.mubr.msk.bf16.vlgmr.msra.gmra.mrb[28].mxu1 %vm206_vm4, %v1318_v30  ;;  %2882 = vmatmul.mubr.msk.bf16.vlgmr.msra.gmra.mrb[16].mxu0 %vm206_vm4, %v1318_v30 }
 0xa2b   :  { %2870 = vmatpush3.bf16.msra.mxu1 %v3061_v29  ;;  %2873 = vmatprep.mubr.msk.bf16.mxu1 %vm3137_vm3, %v3136_v11 }
 0xa2c   :  { %2871 = vmatprep.subr.bf16.mxu1 %v3136_v11  ;;  %3021 = vmatpush3.bf16.msra.mxu0 %v3335_v36 }
 0xa2d   :  { %3022 = vmatprep.subr.bf16.mxu0 %v3138_v35  ;;  %2904 = vmatprep.mubr.msk.f32.mxu0 %vm3137_vm3, %v3136_v11 }
 0xa2f   :  { %2872 = vmatpush3.bf16.msra.mxu1 %v3062_v31 }
 0xa30   :  { %3013 = vmatprep.subr.bf16.mxu1 %v3138_v35  ;;  %3024 = vmatpush3.bf16.msra.mxu0 %v3348_v39 }
 0xa31   :  { %3025 = vmatprep.subr.bf16.mxu0 %v3138_v35 }
 0xa32   :  { %2874 = vmatmul.mubr.msk.bf16.vlgmr.msra.gmra.mrb[32].mxu1 %vm206_vm4, %v1318_v30 }
 0xa33   :  { %3015 = vmatpush3.bf16.msra.mxu1 %v3335_v36  ;;  %2893 = vmatprep.mubr.msk.f32.mxu1 %vm3137_vm3, %v3136_v11 }
 0xa34   :  { %3016 = vmatprep.subr.bf16.mxu1 %v3138_v35 }
 0xa37   :  { %3018 = vmatpush3.bf16.msra.mxu1 %v3348_v39 }
 0xa38   :  { %2907 = vmatprep.subr.mxu1 %v3136_v11 }
 0xafd   :  { %v1381_v32 = vpop.f32.mrb[28].mxu1  ;;  %v3531_v33 = vpop.f32.mrb[16].mxu0 }
 0xafe   :  { %v2867_v34 = vpop.f32.mrb[29].mxu1  ;;  %v2883_v37 = vpop.f32.mrb[17].mxu0  ;;  %v1382_v46 = vadd.f32 %v2548_v43, %v1381_v32 }
 0xaff   :  { %v1384_v38 = vpop.f32.mrb[30].mxu1  ;;  %v3533_v40 = vpop.f32.mrb[18].mxu0  ;;  %v3064_v34 = vld [vmem:[%s3681_s11 + $0x18] sm:$0xff]  }
 0xb00   :  { %v2868_v41 = vpop.f32.mrb[31].mxu1  ;;  %v2884_v42 = vpop.f32.mrb[19].mxu0  ;;  %v1385_v47 = vadd.f32 %v2548_v43, %v1384_v38 }
 0xb05   :  { %v1447_v45 = vpop.f32.mrb[32].mxu1 }
 0xb06   :  { %v1448_v48 = vadd.f32 %v2557_v44, %v1447_v45  ;;  %v2875_v49 = vpop.f32.mrb[33].mxu1 }
 0xb07   :  { %v1450_v50 = vpop.f32.mrb[34].mxu1 }
 0xb08   :  { %v1520_v51 = vmul.f32 %v1448_v48, %v1382_v46  ;;  %v1829_v52 = vmul.f32 %v1448_v48, %v1385_v47  ;;  %v1451_v53 = vadd.f32 %v2557_v44, %v1450_v50  ;;  %v2876_v54 = vpop.f32.mrb[35].mxu1 }
 0xb0a   :  { %v1594_v55 = vmul.f32 %v1451_v53, %v1382_v46  ;;  %v1903_v56 = vmul.f32 %v1451_v53, %v1385_v47  ;;  %2894 = vmatmul.mubr.msk.f32.vlgmr.msra.gmra.mrb[22].mxu1 %vm206_vm4, %v1520_v51  ;;  %v2587_v46 = vld [vmem:[%s3682_s12 + $0x1] ss:$0 sm:$0xff] }
 0xb0b   :  { %2908 = vmatpush3.msk.msra.mxu1 %vm542_vm5, %v3376_v62  ;;  %2909 = vmatprep.mubr.msk.f32.mxu1 %vm3137_vm3, %v3136_v11 }
 0xb0c   :  { %2905 = vmatmul.mubr.msk.f32.vlgmr.msra.gmra.mrb[20].mxu0 %vm206_vm4, %v1594_v55  ;;  %2912 = vmatprep.subr.mxu1 %v3136_v11 }
 0xb0d   :  { %3027 = vmatpush3.bf16.msra.mxu0 %v3335_v36  ;;  %2925 = vmatprep.mubr.msk.f32.mxu0 %vm3137_vm3, %v3136_v11 }
 0xb0e   :  { %3028 = vmatprep.subr.bf16.mxu0 %v3138_v35 }
 0xb11   :  { %3030 = vmatpush3.bf16.msra.mxu0 %v3348_v39 }
 0xb12   :  { %2939 = vmatprep.subr.mxu0 %v3136_v11 }
 0xb14   :  { %2926 = vmatmul.mubr.msk.f32.vlgmr.msra.gmra.mrb[22].mxu0 %vm206_vm4, %v1829_v52 }
 0xb15   :  { %2940 = vmatpush3.msk.msra.mxu0 %vm542_vm5, %v3376_v62  ;;  %2941 = vmatprep.mubr.msk.f32.mxu0 %vm3137_vm3, %v3136_v11 }
 0xb16   :  { %2949 = vmatprep.subr.bf16.mxu0 %v3136_v11 }
 0xbdd   :  { %v1590_v57 = vpop.f32.mrb[22].mxu1 }
 0xbde   :  { %v2895_v58 = vpop.f32.mrb[23].mxu1 }
 0xbdf   :  { %v1664_v59 = vpop.f32.mrb[20].mxu0 }
 0xbe0   :  { %v1668_v60 = vmax.f32 %v1590_v57, %v1664_v59  ;;  %v2906_v61 = vpop.f32.mrb[21].mxu0 }
 0xbe2   :  { %v1669_v63 = vsub.f32 %v1590_v57, %v1668_v60  ;;  %v1672_v0 = vsub.f32 %v1664_v59, %v1668_v60 }
 0xbe4   :  { %v1670_v1 = vmul.f32 1.442695, %v1669_v63  ;;  %v1673_v2 = vmul.f32 1.442695, %v1672_v0 }
 0xbe6   :  { %3091 = vpow2.f32 %v1670_v1 }
 0xbe7   :  { %3093 = vpow2.f32 %v1673_v2  ;;  %v1899_v3 = vpop.f32.mrb[22].mxu0 }
 0xbe8   :  { %v2927_v4 = vpop.f32.mrb[23].mxu0 }
 0xbe9   :  { %v3067_v4 = vld [vmem:[%s3687_s17 + $0x20] sm:$0xff]  }
 0xbf0   :  { %v3092_v5 = vpop.eup %3091 }
 0xbf1   :  { %v3094_v6 = vpop.eup %3093 }
 0xbf2   :  { %v1675_v7 = vadd.f32 %v3094_v6, %v3092_v5 }
 0xbf4   :  { %3095 = vrcp.f32 %v1675_v7 }
 0xbfe   :  { %v3096_v8 = vpop.eup %3095 }
 0xbff   :  { %v1678_v9 = vmul.f32 %v3096_v8, %v3092_v5  ;;  %v1753_v10 = vmul.f32 %v3096_v8, %v3094_v6  ;;  %v3068_v5 = vld [vmem:[%s3687_s17 + $0x28] sm:$0xff]  }
 0xc01   :  { %2910 = vmatmul.mubr.msk.f32.vlgmr.msra.gmra.mrb[36].mxu1 %vm538_vm6, %v1678_v9 }
 0xc02   :  { %2913 = vmatpush3.msk.msra.mxu1 %vm542_vm5, %v3376_v62  ;;  %2914 = vmatprep.mubr.msk.f32.mxu1 %vm3137_vm3, %v3136_v11 }
 0xc03   :  { %3031 = vmatprep.subr.bf16.mxu1 %v3138_v35 }
 0xc05   :  { %2915 = vmatmul.mubr.msk.f32.vlgmr.msra.gmra.mrb[38].mxu1 %vm538_vm6, %v1753_v10 }
 0xc06   :  { %3033 = vmatpush3.bf16.msra.mxu1 %v3335_v36  ;;  %2936 = vmatprep.mubr.msk.f32.mxu1 %vm3137_vm3, %v3136_v11  ;;  %v2566_v36 = vld [vmem:[%s3680_s10 + $0x1] ss:$0 sm:$0xff] }
 0xc07   :  { %3034 = vmatprep.subr.bf16.mxu1 %v3138_v35  ;;  %v1514_v35 = vadd.f32 %v2566_v36, %v3531_v33  ;;  %v1517_v25 = vadd.f32 %v2566_v36, %v3533_v40  ;;  %v3063_v33 = vld [vmem:[%s3681_s11 + $0x10] sm:$0xff]  }
 0xc0a   :  { %3036 = vmatpush3.bf16.msra.mxu1 %v3348_v39 }
 0xc0b   :  { %2944 = vmatprep.subr.mxu1 %v3136_v11 }
 0xc0d   :  { %2937 = vmatmul.mubr.msk.f32.vlgmr.msra.gmra.mrb[40].mxu1 %vm206_vm4, %v1903_v56 }
 0xc0e   :  { %2945 = vmatpush3.msk.msra.mxu1 %vm542_vm5, %v3376_v62  ;;  %2946 = vmatprep.mubr.msk.f32.mxu1 %vm3137_vm3, %v3136_v11 }
 0xc0f   :  { %2957 = vmatprep.subr.bf16.mxu1 %v3136_v11 }
 0xcd4   :  { %v1748_v12 = vpop.f32.mrb[36].mxu1 }
 0xcd5   :  { %v1752_v39 = vmul.f32 %v1748_v12, %v1514_v35  ;;  %v2911_v27 = vpop.f32.mrb[37].mxu1 }
 0xcd8   :  { %v1823_v13 = vpop.f32.mrb[38].mxu1 }
 0xcd9   :  { %v1827_v14 = vmul.f32 %v1823_v13, %v1517_v25  ;;  %v2916_v15 = vpop.f32.mrb[39].mxu1 }
 0xcdb   :  { %v1828_v62 = vadd.f32 %v1827_v14, %v1752_v39  ;;  %v2593_v39 = vld [vmem:[%s3683_s13 + $0x1] ss:$0 sm:$0xff] }
 0xcdc   :  { %v2594_v14 = vld [vmem:[%s3684_s14 + $0x1] ss:$0 sm:$0xff] }
 0xce0   :  { %v1973_v16 = vpop.f32.mrb[40].mxu1 }
 0xce1   :  { %v1977_v17 = vmax.f32 %v1899_v3, %v1973_v16  ;;  %v2938_v18 = vpop.f32.mrb[41].mxu1 }
 0xce2   :  { %v3069_v18 = vld [vmem:[%s3687_s17 + $0x30] sm:$0xff]  }
 0xce3   :  { %v1978_v19 = vsub.f32 %v1899_v3, %v1977_v17  ;;  %v1981_v20 = vsub.f32 %v1973_v16, %v1977_v17  ;;  %v3066_v3 = vld [vmem:[%s3685_s15 + $0x18] sm:$0xff]  }
 0xce5   :  { %v1979_v21 = vmul.f32 1.442695, %v1978_v19  ;;  %v1982_v22 = vmul.f32 1.442695, %v1981_v20  ;;  %v3070_v19 = vld [vmem:[%s3687_s17 + $0x38] sm:$0xff]  }
 0xce6   :  { %v2600_v20 = vld [vmem:[%s3711_s26 + $0x1] ss:$0 sm:$0xff] }
 0xce7   :  { %3097 = vpow2.f32 %v1979_v21 }
 0xce8   :  { %3099 = vpow2.f32 %v1982_v22 }
 0xcf1   :  { %v3098_v23 = vpop.eup %3097 }
 0xcf2   :  { %v3100_v24 = vpop.eup %3099 }
 0xcf3   :  { %v1984_v29 = vadd.f32 %v3100_v24, %v3098_v23 }
 0xcf5   :  { %3101 = vrcp.f32 %v1984_v29 }
 0xcff   :  { %v3102_v30 = vpop.eup %3101 }
 0xd00   :  { %v1987_v31 = vmul.f32 %v3102_v30, %v3098_v23  ;;  %v2062_v32 = vmul.f32 %v3102_v30, %v3100_v24 }
 0xd02   :  { %2942 = vmatmul.mubr.msk.f32.vlgmr.msra.gmra.mrb[24].mxu0 %vm538_vm6, %v1987_v31  ;;  %2947 = vmatmul.mubr.msk.f32.vlgmr.msra.gmra.mrb[42].mxu1 %vm538_vm6, %v2062_v32 }
 0xd03   :  { %2953 = vmatprep.mubr.msk.bf16.mxu0 %vm3137_vm3, %v3136_v11  ;;  %2961 = vmatprep.mubr.msk.bf16.mxu1 %vm3137_vm3, %v3136_v11 }
 0xd04   :  { %2950 = vmatpush3.bf16.msra.mxu0 %v3063_v33 }
 0xd05   :  { %2951 = vmatprep.subr.bf16.mxu0 %v3136_v11 }
 0xd08   :  { %2952 = vmatpush3.bf16.msra.mxu0 %v3064_v34 }
 0xd09   :  { %2965 = vmatprep.subr.bf16.mxu0 %v3136_v11 }
 0xdd5   :  { %v2057_v37 = vpop.f32.mrb[24].mxu0  ;;  %v2132_v38 = vpop.f32.mrb[42].mxu1 }
 0xdd6   :  { %v2061_v40 = vmul.f32 %v2057_v37, %v1514_v35  ;;  %v2136_v41 = vmul.f32 %v2132_v38, %v1517_v25  ;;  %v2943_v42 = vpop.f32.mrb[25].mxu0  ;;  %v2948_v43 = vpop.f32.mrb[43].mxu1 }
 0xdd8   :  { %v2137_v44 = vadd.f32 %v2136_v41, %v2061_v40 }
 0xdda   :  { %v2138_v45 = vpack.c.bf16 %v2137_v44, %v1828_v62 }
 0xddc   :  { %2954 = vmatmul.mubr.msk.bf16.vlgmr.msra.gmra.mrb[28].mxu0 %vm206_vm4, %v2138_v45 }
 0xddd   :  { %2973 = vmatprep.mubr.msk.bf16.mxu0 %vm3137_vm3, %v3136_v11  ;;  %2966 = vmatpush3.bf16.msra.mxu0 %v3067_v4 }
 0xdde   :  { %2967 = vmatprep.subr.bf16.mxu0 %v3136_v11 }
 0xde1   :  { %2968 = vmatpush3.bf16.msra.mxu0 %v3068_v5 }
 0xde2   :  { %2969 = vmatprep.subr.bf16.mxu0 %v3136_v11 }
 0xde5   :  { %2970 = vmatpush3.bf16.msra.mxu0 %v3069_v18 }
 0xde6   :  { %2971 = vmatprep.subr.bf16.mxu0 %v3136_v11 }
 0xde9   :  { %2972 = vmatpush3.bf16.msra.mxu0 %v3070_v19 }
 0xeaf   :  { %v2201_v47 = vpop.f32.mrb[28].mxu0 }
 0xeb0   :  { %v2202_v48 = vadd.f32 %v2587_v46, %v2201_v47  ;;  %v2955_v49 = vpop.f32.mrb[29].mxu0 }
 0xeb1   :  { %v2204_v50 = vpop.f32.mrb[30].mxu0 }
 0xeb2   :  { %v2205_v51 = vadd.f32 %v2587_v46, %v2204_v50  ;;  %v2956_v52 = vpop.f32.mrb[31].mxu0  ;;  %v2208_v53 = vadd.f32 %v2202_v48, %v3500_v26 }
 0xeb4   :  { %v2214_v54 = vsel %vm206_vm4, %v2208_v53, 0.0  ;;  %v2209_v55 = vadd.f32 %v2205_v51, %v3502_v28  ;;  %v3065_v28 = vld [vmem:[%s3685_s15 + $0x10] sm:$0xff]  }
 0xeb5   :  { %2215 = vadd.xlane.f32.xlu1 %v2214_v54  ;;  %2958 = vmatpush3.bf16.msra.mxu1 %v3065_v28  ;;  %v2622_v28 = vld [vmem:[%s3690_s20 + $0x1] ss:$0 sm:$0xff] }
 0xeb6   :  { %v2217_v56 = vsel %vm206_vm4, %v2209_v55, 0.0  ;;  %2959 = vmatprep.subr.bf16.mxu1 %v3136_v11  ;;  %v2613_v11 = vld [vmem:[%s3688_s18 + $0x1] ss:$0 sm:$0xff] }
 0xeb9   :  { %2218 = vadd.xlane.f32.xlu1 %v2217_v56  ;;  %2960 = vmatpush3.bf16.msra.mxu1 %v3066_v3 }
 0xf42   :  { %v2216_v57 = vpop.xlane.xlu1 %2215 }
 0xf43   :  { %v2220_v58 = vmul.f32 0.03125, %v2216_v57 }
 0xf45   :  { %v2222_v59 = vsub.f32 %v2208_v53, %v2220_v58 }
 0xf46   :  { %v2219_v60 = vpop.xlane.xlu1 %2218 }
 0xf47   :  { %v2221_v61 = vmul.f32 0.03125, %v2219_v60  ;;  %v2224_v63 = vmul.f32 %v2222_v59, %v2222_v59 }
 0xf49   :  { %v2223_v0 = vsub.f32 %v2209_v55, %v2221_v61  ;;  %v2226_v1 = vsel %vm206_vm4, %v2224_v63, 0.0 }
 0xf4a   :  { %2227 = vadd.xlane.f32.xlu1 %v2226_v1  ;;  %v2621_v1 = vld [vmem:[%s3689_s19 + $0x1] ss:$0 sm:$0xff]  ;;  %s3139_s19 = smov [#allocation2]  }
 0xf4b   :  { %v2225_v2 = vmul.f32 %v2223_v0, %v2223_v0  ;;  %s2489_s20 = sshll.u32 %s3139_s19, 4  ;;  %s2490_s20 = int_to_ptr.vmem [resolvable:$true] %s2489_s20 }
 0xf4c   :  { %s3111_s5 = scalar_lea.vmem %s2490_s20, 32  ;;  %p3116_p1 = scmp.lt.s32.totalorder %s2490_s20, %s2490_s20 }
 0xf4d   :  { %v2229_v26 = vsel %vm206_vm4, %v2225_v2, 0.0  ;;  %p3112_p0 = scmp.ne.s32.totalorder %s2490_s20, %s3111_s5  ;;  %p3117_p2 = scmp.lt.s32.totalorder %s3111_s5, %s3111_s5 }
 0xf4e   :  { %2230 = vadd.xlane.f32.xlu0 %v2229_v26 }
 0xf4f   :  { %p3118_p3 = por %p3117_p2, %p3116_p1 }
 0xf51   :  { %p3119_p4 = pnand %p3118_p3, %p3112_p0 }
 0xfd7   :  { %v2228_v6 = vpop.xlane.xlu1 %2227 }
 0xfd8   :  { %v2232_v7 = vmul.f32 0.03125, %v2228_v6 }
 0xfda   :  { %v2234_v8 = vadd.f32 1e-05, %v2232_v7 }
 0xfdb   :  { %v2231_v9 = vpop.xlane.xlu0 %2230 }
 0xfdc   :  { %3103 = vrsqrt.f32 %v2234_v8  ;;  %v2233_v10 = vmul.f32 0.03125, %v2231_v9 }
 0xfde   :  { %v2235_v36 = vadd.f32 1e-05, %v2233_v10 }
 0xfe0   :  { %3105 = vrsqrt.f32 %v2235_v36 }
 0xfe6   :  { %v3104_v35 = vpop.eup %3103 }
 0xfe7   :  { %v2238_v12 = vmul.f32 %v3104_v35, %v2222_v59 }
 0xfe9   :  { %v2246_v25 = vmul.f32 %v2593_v39, %v2238_v12 }
 0xfea   :  { %v3106_v27 = vpop.eup %3105 }
 0xfeb   :  { %v2239_v13 = vmul.f32 %v3106_v27, %v2223_v0  ;;  %v2254_v62 = vadd.f32 %v2594_v14, %v2246_v25 }
 0xfed   :  { %v2247_v15 = vmul.f32 %v2593_v39, %v2239_v13 }
 0xfef   :  { %v2255_v16 = vadd.f32 %v2594_v14, %v2247_v15 }
 0xff1   :  { %v2256_v17 = vpack.c.bf16 %v2255_v16, %v2254_v62 }
 0xff3   :  { %2962 = vmatmul.mubr.msk.bf16.vlgmr.msra.gmra.mrb[44].mxu1 %vm206_vm4, %v2256_v17 }
0x10c6   :  { %v2319_v21 = vpop.f32.mrb[44].mxu1 }
0x10c7   :  { %v2320_v22 = vadd.f32 %v2600_v20, %v2319_v21  ;;  %v2963_v23 = vpop.f32.mrb[45].mxu1 }
0x10c8   :  { %v2322_v24 = vpop.f32.mrb[46].mxu1 }
0x10c9   :  { %v2323_v29 = vadd.f32 %v2600_v20, %v2322_v24  ;;  %v2964_v30 = vpop.f32.mrb[47].mxu1  ;;  %v2326_v31 = vmax.f32 %v2320_v22, 0.0 }
0x10cb   :  { %v2327_v32 = vmax.f32 %v2323_v29, 0.0 }
0x10cd   :  { %v2328_v33 = vpack.c.bf16 %v2327_v32, %v2326_v31 }
0x10cf   :  { %2974 = vmatmul.mubr.msk.bf16.vlgmr.msra.gmra.mrb[32].mxu0 %vm1227_vm7, %v2328_v33 }
0x11a2   :  { %v2407_v34 = vpop.f32.mrb[32].mxu0 }
0x11a3   :  { %v2408_v37 = vadd.f32 %v2613_v11, %v2407_v34  ;;  %v2975_v38 = vpop.f32.mrb[33].mxu0 }
0x11a4   :  { %v2410_v40 = vpop.f32.mrb[34].mxu0 }
0x11a5   :  { %v2411_v41 = vadd.f32 %v2613_v11, %v2410_v40  ;;  %v2976_v42 = vpop.f32.mrb[35].mxu0  ;;  %v2414_v43 = vadd.f32 %v2408_v37, %v2254_v62 }
0x11a7   :  { %v2420_v44 = vsel %vm206_vm4, %v2414_v43, 0.0  ;;  %v2415_v45 = vadd.f32 %v2411_v41, %v2255_v16 }
0x11a8   :  { %2421 = vadd.xlane.f32.xlu1 %v2420_v44 }
0x11a9   :  { %v2423_v46 = vsel %vm206_vm4, %v2415_v45, 0.0 }
0x11aa   :  { %2424 = vadd.xlane.f32.xlu0 %v2423_v46 }
0x1235   :  { %v2422_v47 = vpop.xlane.xlu1 %2421 }
0x1236   :  { %v2426_v48 = vmul.f32 0.03125, %v2422_v47 }
0x1237   :  { %v2425_v49 = vpop.xlane.xlu0 %2424 }
0x1238   :  { %v2428_v50 = vsub.f32 %v2414_v43, %v2426_v48  ;;  %v2427_v51 = vmul.f32 0.03125, %v2425_v49 }
0x123a   :  { %v2429_v52 = vsub.f32 %v2415_v45, %v2427_v51  ;;  %v2430_v53 = vmul.f32 %v2428_v50, %v2428_v50 }
0x123c   :  { %v2432_v54 = vsel %vm206_vm4, %v2430_v53, 0.0  ;;  %v2431_v55 = vmul.f32 %v2429_v52, %v2429_v52 }
0x123d   :  { %2433 = vadd.xlane.f32.xlu1 %v2432_v54 }
0x123e   :  { %v2435_v56 = vsel %vm206_vm4, %v2431_v55, 0.0 }
0x123f   :  { %2436 = vadd.xlane.f32.xlu0 %v2435_v56 }
0x12ca   :  { %v2434_v57 = vpop.xlane.xlu1 %2433 }
0x12cb   :  { %v2438_v58 = vmul.f32 0.03125, %v2434_v57 }
0x12cc   :  { %v2437_v59 = vpop.xlane.xlu0 %2436 }
0x12cd   :  { %v2440_v60 = vadd.f32 1e-05, %v2438_v58  ;;  %v2439_v61 = vmul.f32 0.03125, %v2437_v59 }
0x12cf   :  { %3107 = vrsqrt.f32 %v2440_v60  ;;  %v2441_v63 = vadd.f32 1e-05, %v2439_v61 }
0x12d1   :  { %3109 = vrsqrt.f32 %v2441_v63 }
0x12d9   :  { %v3108_v0 = vpop.eup %3107 }
0x12da   :  { %v2444_v2 = vmul.f32 %v3108_v0, %v2428_v50 }
0x12db   :  { %v3110_v26 = vpop.eup %3109 }
0x12dc   :  { %v2452_v3 = vmul.f32 %v2621_v1, %v2444_v2  ;;  %v2445_v4 = vmul.f32 %v3110_v26, %v2429_v52 }
0x12de   :  { %v2453_v5 = vmul.f32 %v2621_v1, %v2445_v4  ;;  %v2460_v6 = vadd.f32 %v2622_v28, %v2452_v3 }
0x12e0   :  { %v2461_v7 = vadd.f32 %v2622_v28, %v2453_v5  ;;  %v2462_v8 = vsel %vm206_vm4, %v2460_v6, 0.0 }
0x12e1   :  { %v2463_v9 = vrot.slane %v2462_v8, 4 }
0x12e2   :  { %v2471_v10 = vsel %vm206_vm4, %v2461_v7, 0.0 }
0x12e3   :  { %v2464_v36 = vadd.f32 %v2463_v9, %v2462_v8  ;;  %v2472_v35 = vrot.slane %v2471_v10, 4 }
0x12e5   :  { %v2465_v12 = vrot.slane %v2464_v36, 2  ;;  %v2473_v39 = vadd.f32 %v2472_v35, %v2471_v10 }
0x12e7   :  { %v2466_v27 = vadd.f32 %v2465_v12, %v2464_v36  ;;  %v2474_v25 = vrot.slane %v2473_v39, 2 }
0x12e9   :  { %v2467_v13 = vrot.slane %v2466_v27, 1  ;;  %v2475_v14 = vadd.f32 %v2474_v25, %v2473_v39 }
0x12eb   :  { %v2468_v15 = vadd.f32 %v2467_v13, %v2466_v27  ;;  %v2476_v62 = vrot.slane %v2475_v14, 1 }
0x12ed   :  { %v2477_v16 = vadd.f32 %v2476_v62, %v2475_v14  ;;  %v2470_v17 = vmul.f32 0.125, %v2468_v15 }
0x12ef   :  { %v2478_v18 = vmul.f32 0.125, %v2477_v16 }
0x12f1   :  { %v2480_v19 = vsel %vm2479_vm8, %v2470_v17, %v2478_v18 }
0x12f2   :  { %2482 = vst.msk [vmem:[#allocation2] sm:$0x3] %vm2481_vm9, %v2480_v19 }
0x12f3   :  { %3122 = shalt.err (!%p3119_p4)
}
0x12f4   :  { %s3123_s1 = scalar_lea.hbm %s3691_s21, 32 }
0x12f5   :  { %p3124_p5 = scmp.ne.s32.totalorder %s3691_s21, %s3123_s1  ;;  %p3127_p6 = scmp.lt.u32.totalorder %s3123_s1, %s3691_s21 }
0x12f7   :  { %p3129_p7 = pnand %p3127_p6, %p3124_p5 }
0x12f9   :  { %3132 = shalt.err (!%p3129_p7)
}
0x12fa   :  { %2492 = dma.vmem_to_hbm [thread:$0]  %s2490_s20, 32, %s3691_s21, [#allocation3]  }
0x12fb   :  { %3133 = dma.done.wait [#allocation3], 32  }
0x12fc   :  { %3134 = vsyncadd [#allocation3], 4294967264 }
0x12fd   :  { %2496 = vsyncpa [#allocation3], 1 }

</bundles_post_ra>
